<compile_context>
chip_gen: v7x
topology: tpu7x:2x2x1
jax: 0.10.0
libtpu: 0.0.40
codegen_flags: <defaults>
</compile_context>

<pallas_src>
import jax
import jax.numpy as jnp
from jax.experimental import pallas as pl
from jax.experimental.pallas import tpu as pltpu

_BLOCK_N = 256          # tokens per grid step (MXU M fill on v6e/v7x)
_NEG_BIG = -1e30        # padding value for fake vocab columns


def _bigram_logits_kernel(idx_ref, table_ref, logits_ref):
    bn = idx_ref.shape[0]
    vp = table_ref.shape[1]
    idx = idx_ref[...]                                                # (bn, 1) i32
    col = jax.lax.broadcasted_iota(jnp.int32, (bn, vp), 1)
    onehot = (col == idx).astype(jnp.float32)                         # (bn, vp)
    logits_ref[...] = jnp.dot(onehot, table_ref[...],
                              preferred_element_type=jnp.float32)


def _bigram_loss_kernel(idx_ref, tgt_ref, table_ref, logits_ref, nll_ref):
    bn = idx_ref.shape[0]
    vp = table_ref.shape[1]
    idx = idx_ref[...]                                                # (bn, 1) i32
    col = jax.lax.broadcasted_iota(jnp.int32, (bn, vp), 1)
    onehot = (col == idx).astype(jnp.float32)                         # (bn, vp)
    logits = jnp.dot(onehot, table_ref[...],
                     preferred_element_type=jnp.float32)              # (bn, vp)
    logits_ref[...] = logits

    # Cross-entropy per token. Padded vocab columns hold -1e30 (set by the
    # wrapper), so they vanish from both the max and the exp-sum.
    m = jnp.max(logits, axis=-1, keepdims=True)                       # (bn, 1)
    lse = m + jnp.log(jnp.sum(jnp.exp(logits - m), axis=-1, keepdims=True))
    tgt = tgt_ref[...]                                                # (bn, 1) i32
    tgt_logit = jnp.sum(jnp.where(col == tgt, logits, 0.0),
                        axis=-1, keepdims=True)                       # (bn, 1)
    nll_ref[...] = lse - tgt_logit                                    # (bn, 1)


def bigram_forward(idx, table, targets=None, *, block_n=_BLOCK_N):
    """Forward pass of BigramLanguageModel. Returns (logits, loss)."""
    B, T = idx.shape
    V = table.shape[0]
    N = B * T

    v_pad = max(128, pl.cdiv(V, 128) * 128)
    n_pad = pl.cdiv(N, block_n) * block_n
    num_blocks = n_pad // block_n

    # Pad table: fake vocab columns -> -1e30 (ignored by LSE, sliced off below).
    table_p = jnp.pad(table.astype(jnp.float32),
                      ((0, v_pad - V), (0, v_pad - V)),
                      constant_values=_NEG_BIG)
    # Pad token ids with 0 (a valid row); padded rows are sliced off below.
    idx_flat = jnp.pad(idx.astype(jnp.int32).reshape(N),
                       (0, n_pad - N)).reshape(n_pad, 1)

    idx_spec = pl.BlockSpec((block_n, 1), lambda i: (i, 0))
    table_spec = pl.BlockSpec((v_pad, v_pad), lambda i: (0, 0))
    logits_spec = pl.BlockSpec((block_n, v_pad), lambda i: (i, 0))
    nll_spec = pl.BlockSpec((block_n, 1), lambda i: (i, 0))

    cparams = pltpu.CompilerParams(
        dimension_semantics=("parallel",),
        vmem_limit_bytes=32 * 1024 * 1024,
    )
    matmul_flops = 2 * n_pad * v_pad * v_pad
    io_bytes = (n_pad * v_pad * 4                      # logits writeback
                + num_blocks * v_pad * v_pad * 4       # table reads
                + 3 * n_pad * 4)                       # idx / tgt / nll

    if targets is None:
        # Logits-only variant: no CE epilogue, no loss output.
        logits_pad = pl.pallas_call(
            _bigram_logits_kernel,
            out_shape=jax.ShapeDtypeStruct((n_pad, v_pad), jnp.float32),
            grid=(num_blocks,),
            in_specs=[idx_spec, table_spec],
            out_specs=logits_spec,
            compiler_params=cparams,
            cost_estimate=pl.CostEstimate(
                flops=matmul_flops, transcendentals=0, bytes_accessed=io_bytes),
        )(idx_flat, table_p)
        logits = logits_pad[:N, :V].reshape(B, T, V)
        return logits, None

    tgt_flat = jnp.pad(targets.astype(jnp.int32).reshape(N),
                       (0, n_pad - N)).reshape(n_pad, 1)

    logits_pad, nll = pl.pallas_call(
        _bigram_loss_kernel,
        out_shape=(
            jax.ShapeDtypeStruct((n_pad, v_pad), jnp.float32),
            jax.ShapeDtypeStruct((n_pad, 1), jnp.float32),
        ),
        grid=(num_blocks,),
        in_specs=[idx_spec, idx_spec, table_spec],
        out_specs=(logits_spec, nll_spec),
        compiler_params=cparams,
        cost_estimate=pl.CostEstimate(
            flops=matmul_flops, transcendentals=n_pad * v_pad,
            bytes_accessed=io_bytes),
    )(idx_flat, tgt_flat, table_p)

    logits = logits_pad[:N, :V].reshape(B, T, V)
    loss = jnp.sum(nll[:N, 0]) / N       # mean CE over real tokens (pad sliced off)
    return logits, loss


def _reference(idx, table, targets):
    logits = table[idx]                                   # (B, T, V)
    B, T, V = logits.shape
    lf = logits.reshape(B * T, V)
    tf = targets.reshape(B * T)
    lse = jax.nn.logsumexp(lf, axis=-1)
    tgt_logit = jnp.take_along_axis(lf, tf[:, None], axis=-1)[:, 0]
    return logits, jnp.mean(lse - tgt_logit)


if __name__ == "__main__":
    key = jax.random.PRNGKey(0)
    vocab_size = 65   # e.g. tiny-shakespeare character vocabulary
    B, T = 2, 8

    k_tab, k_idx, k_tgt = jax.random.split(key, 3)
    # nn.Embedding default init: N(0, 1)
    table = jax.random.normal(k_tab, (vocab_size, vocab_size), dtype=jnp.float32)
    idx = jax.random.randint(k_idx, (B, T), 0, vocab_size, dtype=jnp.int32)
    targets = jax.random.randint(k_tgt, (B, T), 0, vocab_size, dtype=jnp.int32)

    logits, loss = bigram_forward(idx, table, targets)
    logits = jax.block_until_ready(logits)
    loss = jax.block_until_ready(loss)

    ref_logits, ref_loss = _reference(idx, table, targets)
    assert logits.shape == (B, T, vocab_size)
    assert jnp.allclose(logits, ref_logits, atol=1e-5, rtol=1e-5)
    assert jnp.allclose(loss, ref_loss, atol=1e-5, rtol=1e-5)

    # targets=None path (loss is None, mirrors PyTorch; skips the CE epilogue).
    logits_only, none_loss = bigram_forward(idx, table, None)
    jax.block_until_ready(logits_only)
    assert none_loss is None
    assert jnp.allclose(logits_only, ref_logits, atol=1e-5, rtol=1e-5)

    # TODO(synk): generate() uses torch.multinomial sampling; the sampling loop is
    # host-side control flow and is not implemented as a Pallas kernel here.
    print("KERNEL_OK")
</pallas_src>

<mosaic_0001>
module attributes {stable_mosaic.version = 11 : i64} {
  func.func @_bigram_loss_kernel(%arg0: i32, %arg1: memref<256x1xi32, #tpu.memory_space<vmem>>, %arg2: memref<256x1xi32, #tpu.memory_space<vmem>>, %arg3: memref<128x128xf32, #tpu.memory_space<vmem>>, %arg4: memref<256x128xf32, #tpu.memory_space<vmem>>, %arg5: memref<256x1xf32, #tpu.memory_space<vmem>>) attributes {dimension_semantics = [#tpu.dimension_semantics<parallel>], iteration_bounds = array<i64: 1>, scalar_prefetch = 0 : i64, scratch_operands = 0 : i64, tpu.core_type = #tpu.core_type<tc>, window_params = [{transform_indices = @transform_0, window_bounds = array<i64: 256, 1>}, {transform_indices = @transform_1, window_bounds = array<i64: 256, 1>}, {pipeline_mode = #tpu.pipeline_mode<synchronous>, transform_indices = @transform_2, window_bounds = array<i64: 128, 128>}, {transform_indices = @transform_3, window_bounds = array<i64: 256, 128>}, {transform_indices = @transform_4, window_bounds = array<i64: 256, 1>}]} {
    %c0 = arith.constant 0 : index
    %c0_0 = arith.constant 0 : index
    %0 = vector.load %arg1[%c0, %c0_0] : memref<256x1xi32, #tpu.memory_space<vmem>>, vector<256x1xi32>
    %1 = tpu.iota {dimensions = array<i32: 1>} : vector<256x128xi32>
    %2 = vector.broadcast %0 : vector<256x1xi32> to vector<256x128xi32>
    %3 = arith.cmpi eq, %1, %2 : vector<256x128xi32>
    %4 = arith.extui %3 : vector<256x128xi1> to vector<256x128xi32>
    %5 = arith.sitofp %4 : vector<256x128xi32> to vector<256x128xf32>
    %c0_1 = arith.constant 0 : index
    %c0_2 = arith.constant 0 : index
    %6 = vector.load %arg3[%c0_1, %c0_2] : memref<128x128xf32, #tpu.memory_space<vmem>>, vector<128x128xf32>
    %cst = arith.constant dense<0.000000e+00> : vector<256x128xf32>
    %7 = tpu.matmul %5, %6, %cst {dimension_numbers = #tpu.dot_dimension_numbers<[1], [0], [0], [1], [0, 0, 1, 1], [], []>} : vector<256x128xf32>, vector<128x128xf32>, vector<256x128xf32> -> vector<256x128xf32>
    %c0_3 = arith.constant 0 : index
    %c0_4 = arith.constant 0 : index
    %8 = vector.load %arg4[%c0_3, %c0_4] : memref<256x128xf32, #tpu.memory_space<vmem>>, vector<256x128xf32>
    tpu.vector_store %arg4[%c0_3, %c0_4], %7 {strides = array<i32>} : memref<256x128xf32, #tpu.memory_space<vmem>>, vector<256x128xf32>,
    %cst_5 = arith.constant dense<0xFF800000> : vector<256xf32>
    %9 = vector.multi_reduction <maximumf>, %7, %cst_5 [1] : vector<256x128xf32> to vector<256xf32>
    %10 = vector.shape_cast %9 : vector<256xf32> to vector<256x1xf32>
    %11 = vector.broadcast %10 : vector<256x1xf32> to vector<256x128xf32>
    %12 = arith.subf %7, %11 : vector<256x128xf32>
    %13 = math.exp %12 : vector<256x128xf32>
    %cst_6 = arith.constant dense<0.000000e+00> : vector<256xf32>
    %14 = vector.multi_reduction <add>, %13, %cst_6 [1] : vector<256x128xf32> to vector<256xf32>
    %15 = vector.shape_cast %14 : vector<256xf32> to vector<256x1xf32>
    %16 = math.log %15 : vector<256x1xf32>
    %17 = arith.addf %10, %16 : vector<256x1xf32>
    %c0_7 = arith.constant 0 : index
    %c0_8 = arith.constant 0 : index
    %18 = vector.load %arg2[%c0_7, %c0_8] : memref<256x1xi32, #tpu.memory_space<vmem>>, vector<256x1xi32>
    %19 = vector.broadcast %18 : vector<256x1xi32> to vector<256x128xi32>
    %20 = arith.cmpi eq, %1, %19 : vector<256x128xi32>
    %cst_9 = arith.constant 0.000000e+00 : f32
    %21 = vector.broadcast %cst_9 : f32 to vector<256x128xf32>
    %22 = arith.select %20, %7, %21 : vector<256x128xi1>, vector<256x128xf32>
    %cst_10 = arith.constant dense<0.000000e+00> : vector<256xf32>
    %23 = vector.multi_reduction <add>, %22, %cst_10 [1] : vector<256x128xf32> to vector<256xf32>
    %24 = vector.shape_cast %23 : vector<256xf32> to vector<256x1xf32>
    %25 = arith.subf %17, %24 : vector<256x1xf32>
    %c0_11 = arith.constant 0 : index
    %c0_12 = arith.constant 0 : index
    %26 = vector.load %arg5[%c0_11, %c0_12] : memref<256x1xf32, #tpu.memory_space<vmem>>, vector<256x1xf32>
    tpu.vector_store %arg5[%c0_11, %c0_12], %25 {strides = array<i32>} : memref<256x1xf32, #tpu.memory_space<vmem>>, vector<256x1xf32>,
    return
  }
  func.func @transform_0(%arg0: i32) -> (i32, i32) {
    %c0_i32 = arith.constant 0 : i32
    %c0_i32_0 = arith.constant 0 : i32
    return %arg0, %c0_i32 : i32, i32
  }
  func.func @transform_1(%arg0: i32) -> (i32, i32) {
    %c0_i32 = arith.constant 0 : i32
    %c0_i32_0 = arith.constant 0 : i32
    return %arg0, %c0_i32 : i32, i32
  }
  func.func @transform_2(%arg0: i32) -> (i32, i32) {
    %c0_i32 = arith.constant 0 : i32
    %c0_i32_0 = arith.constant 0 : i32
    %c0_i32_1 = arith.constant 0 : i32
    return %c0_i32, %c0_i32_0 : i32, i32
  }
  func.func @transform_3(%arg0: i32) -> (i32, i32) {
    %c0_i32 = arith.constant 0 : i32
    %c0_i32_0 = arith.constant 0 : i32
    return %arg0, %c0_i32 : i32, i32
  }
  func.func @transform_4(%arg0: i32) -> (i32, i32) {
    %c0_i32 = arith.constant 0 : i32
    %c0_i32_0 = arith.constant 0 : i32
    return %arg0, %c0_i32 : i32, i32
  }
}

</mosaic_0001>

<bundles_post_ra>
// kernel: tpu_custom_call.1
= control target key start
LH: loop header
LB: loop body
LE: loop exit
PB: predicated region body
PF: predicated region fallthrough
CT: control target
= control target key end

     0   :  { %v1576_v2 = vmov 0   ;;  %s2533_s0 = inlined_call_operand.vmem [shape: s32[256,1], index: 0, kind: input, shape index: {}]   ;;  %s2534_s1 = inlined_call_operand.vmem [shape: s32[256,1], index: 1, kind: input, shape index: {}]   ;;  %s2535_s2 = inlined_call_operand.vmem [shape: f32[128,128], index: 2, kind: input, shape index: {}]   ;;  %s2536_s3 = inlined_call_operand.hbm [shape: f32[256,128], index: 3, kind: output, shape index: {0}]   ;;  %s2537_s4 = inlined_call_operand.vmem [shape: f32[256,1], index: 4, kind: output, shape index: {1}]  }
   0x1   :  { %v19_v0 = vld [vmem:[%s2533_s0 + $0x10] sm:$0xff]  ;;  %v17_v1 = vld [vmem:[%s2533_s0] sm:$0xff]  ;;  %1423 = vset.pattern.permute.xlu1 %v1576_v2  ;;  %1422 = vset.pattern.permute.xlu0 %v1576_v2  ;;  %v18_v4 = vld [vmem:[%s2533_s0 + $0x8] sm:$0xff] }
   0x2   :  { %58 = vperm.xlu1 %1423, %v19_v0   ;;  %52 = vperm.xlu0 %1422, %v17_v1   ;;  %v33_v3 = vld [vmem:[%s2533_s0 + $0x80] sm:$0xff]  ;;  %v35_v5 = vld [vmem:[%s2533_s0 + $0x90] sm:$0xff]  ;;  %v34_v6 = vld [vmem:[%s2533_s0 + $0x88] sm:$0xff] }
   0x3   :  { %v36_v7 = vld [vmem:[%s2533_s0 + $0x98] sm:$0xff]  ;;  %v37_v9 = vld [vmem:[%s2533_s0 + $0xa0] sm:$0xff]  ;;  %v244_v12 = vld [vmem:[%s2535_s2 + $0x8] sm:$0xff] }
   0x4   :  { %v20_v8 = vld [vmem:[%s2533_s0 + $0x18] sm:$0xff]  ;;  %v21_v10 = vld [vmem:[%s2533_s0 + $0x20] sm:$0xff]  ;;  %v245_v14 = vld [vmem:[%s2535_s2 + $0x10] sm:$0xff] }
   0x5   :  { %v243_v11 = vld [vmem:[%s2535_s2] sm:$0xff]  ;;  %v38_v15 = vld [vmem:[%s2533_s0 + $0xa8] sm:$0xff]  ;;  %v246_v17 = vld [vmem:[%s2535_s2 + $0x18] sm:$0xff] }
   0x6   :  { %100 = vperm.xlu1 %1423, %v33_v3   ;;  %55 = vperm.xlu0 %1422, %v18_v4   ;;  %v1369_v13 = vpack.c.bf16 %v244_v12, %v243_v11  ;;  %v22_v16 = vld [vmem:[%s2533_s0 + $0x28] sm:$0xff]  ;;  %v1373_v18 = vpack.c.bf16 %v246_v17, %v245_v14  ;;  %v247_v19 = vld [vmem:[%s2535_s2 + $0x20] sm:$0xff]  ;;  %v39_v21 = vld [vmem:[%s2533_s0 + $0xb0] sm:$0xff] }
   0x7   :  { %v248_v20 = vld [vmem:[%s2535_s2 + $0x28] sm:$0xff]  ;;  %v23_v22 = vld [vmem:[%s2533_s0 + $0x30] sm:$0xff]  ;;  %v250_v25 = vld [vmem:[%s2535_s2 + $0x38] sm:$0xff] }
   0x8   :  { %1370 = vmatprep.subr.bf16.mxu0 %v1369_v13  ;;  %1401 = vmatprep.subr.bf16.mxu1 %v1369_v13  ;;  %v1377_v23 = vpack.c.bf16 %v248_v20, %v247_v19  ;;  %v249_v24 = vld [vmem:[%s2535_s2 + $0x30] sm:$0xff] }
   0x9   :  { %1372 = vmatpush3.bf16.msra.mxu0 %v1369_v13  ;;  %1409 = vmatpush3.bf16.msra.mxu1 %v1369_v13 }
   0xa   :  { %106 = vperm.xlu1 %1423, %v35_v5   ;;  %103 = vperm.xlu0 %1422, %v34_v6  }
   0xb   :  { %1374 = vmatprep.subr.bf16.mxu0 %v1373_v18  ;;  %1402 = vmatprep.subr.bf16.mxu1 %v1373_v18 }
   0xd   :  { %1376 = vmatpush3.bf16.msra.mxu0 %v1373_v18  ;;  %1410 = vmatpush3.bf16.msra.mxu1 %v1373_v18 }
   0xe   :  { %109 = vperm.xlu1 %1423, %v36_v7   ;;  %61 = vperm.xlu0 %1422, %v20_v8  }
  0x12   :  { %112 = vperm.xlu1 %1423, %v37_v9   ;;  %64 = vperm.xlu0 %1422, %v21_v10  }
  0x16   :  { %115 = vperm.xlu1 %1423, %v38_v15   ;;  %67 = vperm.xlu0 %1422, %v22_v16  }
  0x1a   :  { %118 = vperm.xlu1 %1423, %v39_v21   ;;  %70 = vperm.xlu0 %1422, %v23_v22  }
  0x1b   :  { %10 = vsyncpa [#allocation3], 0  ;;  %v40_v26 = vld [vmem:[%s2533_s0 + $0xb8] sm:$0xff]  ;;  %1378 = vmatprep.subr.bf16.mxu0 %v1377_v23  ;;  %1403 = vmatprep.subr.bf16.mxu1 %v1377_v23  ;;  %v1381_v28 = vpack.c.bf16 %v250_v25, %v249_v24  ;;  %v251_v29 = vld [vmem:[%s2535_s2 + $0x40] sm:$0xff] }
  0x1c   :  { %v24_v27 = vld [vmem:[%s2533_s0 + $0x38] sm:$0xff]  ;;  %v252_v30 = vld [vmem:[%s2535_s2 + $0x48] sm:$0xff]  ;;  %1380 = vmatpush3.bf16.msra.mxu0 %v1377_v23  ;;  %1411 = vmatpush3.bf16.msra.mxu1 %v1377_v23  ;;  %v41_v31 = vld [vmem:[%s2533_s0 + $0xc0] sm:$0xff]  ;;  %v49_v23 = vlaneseq }
  0x1d   :  { %v25_v32 = vld [vmem:[%s2533_s0 + $0x40] sm:$0xff]  ;;  %1382 = vmatprep.subr.bf16.mxu0 %v1381_v28  ;;  %1404 = vmatprep.subr.bf16.mxu1 %v1381_v28  ;;  %v1385_v33 = vpack.c.bf16 %v252_v30, %v251_v29  ;;  %v253_v34 = vld [vmem:[%s2535_s2 + $0x50] sm:$0xff]  ;;  %v254_v35 = vld [vmem:[%s2535_s2 + $0x58] sm:$0xff]  ;;  %v1577_v29 = vmov 1.0  }
  0x1e   :  { %121 = vperm.xlu1 %1423, %v40_v26   ;;  %73 = vperm.xlu0 %1422, %v24_v27   ;;  %v42_v36 = vld [vmem:[%s2533_s0 + $0xc8] sm:$0xff]  ;;  %v1389_v38 = vpack.c.bf16 %v254_v35, %v253_v34  ;;  %v255_v39 = vld [vmem:[%s2535_s2 + $0x60] sm:$0xff]  ;;  %v43_v41 = vld [vmem:[%s2533_s0 + $0xd0] sm:$0xff]  ;;  %v1843_v25 = vand.u32 127, %v49_v23 }
  0x1f   :  { %v26_v37 = vld [vmem:[%s2533_s0 + $0x48] sm:$0xff]  ;;  %v27_v42 = vld [vmem:[%s2533_s0 + $0x50] sm:$0xff]  ;;  %v258_v45 = vld [vmem:[%s2535_s2 + $0x78] sm:$0xff] }
  0x20   :  { %1384 = vmatpush3.bf16.msra.mxu0 %v1381_v28  ;;  %1412 = vmatpush3.bf16.msra.mxu1 %v1381_v28  ;;  %v256_v40 = vld [vmem:[%s2535_s2 + $0x68] sm:$0xff]  ;;  %v257_v44 = vld [vmem:[%s2535_s2 + $0x70] sm:$0xff]  ;;  %v44_v46 = vld [vmem:[%s2533_s0 + $0xd8] sm:$0xff] }
  0x21   :  { %1386 = vmatprep.subr.bf16.mxu0 %v1385_v33  ;;  %1405 = vmatprep.subr.bf16.mxu1 %v1385_v33  ;;  %v1393_v43 = vpack.c.bf16 %v256_v40, %v255_v39  ;;  %v28_v47 = vld [vmem:[%s2533_s0 + $0x58] sm:$0xff]  ;;  %v1397_v48 = vpack.c.bf16 %v258_v45, %v257_v44  ;;  %v45_v49 = vld [vmem:[%s2533_s0 + $0xe0] sm:$0xff]  ;;  %v46_v51 = vld [vmem:[%s2533_s0 + $0xe8] sm:$0xff] }
  0x22   :  { %124 = vperm.xlu1 %1423, %v41_v31   ;;  %76 = vperm.xlu0 %1422, %v25_v32   ;;  %v29_v50 = vld [vmem:[%s2533_s0 + $0x60] sm:$0xff]  ;;  %v30_v52 = vld [vmem:[%s2533_s0 + $0x68] sm:$0xff]  ;;  %v47_v53 = vld [vmem:[%s2533_s0 + $0xf0] sm:$0xff] }
  0x23   :  { %v31_v54 = vld [vmem:[%s2533_s0 + $0x70] sm:$0xff]  ;;  %v48_v55 = vld [vmem:[%s2533_s0 + $0xf8] sm:$0xff]  ;;  %v836_v57 = vld [vmem:[%s2534_s1] sm:$0xff] }
  0x24   :  { %1388 = vmatpush3.bf16.msra.mxu0 %v1385_v33  ;;  %1413 = vmatpush3.bf16.msra.mxu1 %v1385_v33  ;;  %v32_v56 = vld [vmem:[%s2533_s0 + $0x78] sm:$0xff]  ;;  %v837_v58 = vld [vmem:[%s2534_s1 + $0x8] sm:$0xff]  ;;  %v838_v59 = vld [vmem:[%s2534_s1 + $0x10] sm:$0xff] }
  0x25   :  { %1390 = vmatprep.subr.bf16.mxu0 %v1389_v38  ;;  %1406 = vmatprep.subr.bf16.mxu1 %v1389_v38  ;;  %v840_v60 = vld [vmem:[%s2534_s1 + $0x20] sm:$0xff]  ;;  %v839_v61 = vld [vmem:[%s2534_s1 + $0x18] sm:$0xff]  ;;  %v842_v62 = vld [vmem:[%s2534_s1 + $0x30] sm:$0xff] }
  0x26   :  { %127 = vperm.xlu1 %1423, %v42_v36   ;;  %79 = vperm.xlu0 %1422, %v26_v37   ;;  %v841_v63 = vld [vmem:[%s2534_s1 + $0x28] sm:$0xff]  ;;  %v844_v0 = vld [vmem:[%s2534_s1 + $0x40] sm:$0xff]  ;;  %v843_v1 = vld [vmem:[%s2534_s1 + $0x38] sm:$0xff] }
  0x27   :  { %v846_v2 = vld [vmem:[%s2534_s1 + $0x50] sm:$0xff]  ;;  %v845_v3 = vld [vmem:[%s2534_s1 + $0x48] sm:$0xff]  ;;  %v848_v4 = vld [vmem:[%s2534_s1 + $0x60] sm:$0xff] }
  0x28   :  { %1392 = vmatpush3.bf16.msra.mxu0 %v1389_v38  ;;  %1414 = vmatpush3.bf16.msra.mxu1 %v1389_v38  ;;  %v847_v5 = vld [vmem:[%s2534_s1 + $0x58] sm:$0xff]  ;;  %v850_v6 = vld [vmem:[%s2534_s1 + $0x70] sm:$0xff]  ;;  %v849_v7 = vld [vmem:[%s2534_s1 + $0x68] sm:$0xff] }
  0x29   :  { %1394 = vmatprep.subr.bf16.mxu0 %v1393_v43  ;;  %1407 = vmatprep.subr.bf16.mxu1 %v1393_v43  ;;  %v852_v8 = vld [vmem:[%s2534_s1 + $0x80] sm:$0xff]  ;;  %v851_v9 = vld [vmem:[%s2534_s1 + $0x78] sm:$0xff]  ;;  %v854_v10 = vld [vmem:[%s2534_s1 + $0x90] sm:$0xff] }
  0x2a   :  { %130 = vperm.xlu1 %1423, %v43_v41   ;;  %82 = vperm.xlu0 %1422, %v27_v42   ;;  %v853_v11 = vld [vmem:[%s2534_s1 + $0x88] sm:$0xff]  ;;  %v856_v12 = vld [vmem:[%s2534_s1 + $0xa0] sm:$0xff]  ;;  %v855_v13 = vld [vmem:[%s2534_s1 + $0x98] sm:$0xff] }
  0x2b   :  { %v858_v14 = vld [vmem:[%s2534_s1 + $0xb0] sm:$0xff]  ;;  %v857_v15 = vld [vmem:[%s2534_s1 + $0xa8] sm:$0xff]  ;;  %v860_v16 = vld [vmem:[%s2534_s1 + $0xc0] sm:$0xff] }
  0x2c   :  { %1396 = vmatpush3.bf16.msra.mxu0 %v1393_v43  ;;  %1415 = vmatpush3.bf16.msra.mxu1 %v1393_v43  ;;  %v859_v17 = vld [vmem:[%s2534_s1 + $0xb8] sm:$0xff]  ;;  %v862_v18 = vld [vmem:[%s2534_s1 + $0xd0] sm:$0xff]  ;;  %v861_v19 = vld [vmem:[%s2534_s1 + $0xc8] sm:$0xff] }
  0x2d   :  { %1398 = vmatprep.subr.bf16.mxu0 %v1397_v48  ;;  %1408 = vmatprep.subr.bf16.mxu1 %v1397_v48  ;;  %v864_v20 = vld [vmem:[%s2534_s1 + $0xe0] sm:$0xff]  ;;  %v863_v21 = vld [vmem:[%s2534_s1 + $0xd8] sm:$0xff]  ;;  %v866_v22 = vld [vmem:[%s2534_s1 + $0xf0] sm:$0xff] }
  0x2e   :  { %133 = vperm.xlu1 %1423, %v44_v46   ;;  %85 = vperm.xlu0 %1422, %v28_v47   ;;  %v865_v24 = vld [vmem:[%s2534_s1 + $0xe8] sm:$0xff]  ;;  %v867_v26 = vld [vmem:[%s2534_s1 + $0xf8] sm:$0xff]  ;;  %s1578_s1 = smov [#allocation2]  }
  0x2f   :  { %s1162_s0 = sshll.u32 %s1578_s1, 4  ;;  %s1163_s0 = int_to_ptr.vmem [resolvable:$true] %s1162_s0 }
  0x30   :  { %1400 = vmatpush3.bf16.msra.mxu0 %v1397_v48  ;;  %1416 = vmatpush3.bf16.msra.mxu1 %v1397_v48  ;;  %s1552_s14 = scalar_lea.vmem %s1163_s0, 4096  ;;  %p1557_p1 = scmp.lt.s32.totalorder %s1163_s0, %s1163_s0 }
  0x31   :  { %p1553_p0 = scmp.ne.s32.totalorder %s1163_s0, %s1552_s14  ;;  %p1558_p2 = scmp.lt.s32.totalorder %s1552_s14, %s1552_s14 }
  0x32   :  { %136 = vperm.xlu1 %1423, %v45_v49   ;;  %88 = vperm.xlu0 %1422, %v29_v50  }
  0x33   :  { %p1559_p3 = por %p1558_p2, %p1557_p1 }
  0x35   :  { %p1560_p4 = pnand %p1559_p3, %p1553_p0 }
  0x36   :  { %139 = vperm.xlu1 %1423, %v46_v51   ;;  %91 = vperm.xlu0 %1422, %v30_v52  }
  0x3a   :  { %142 = vperm.xlu1 %1423, %v47_v53   ;;  %94 = vperm.xlu0 %1422, %v31_v54  }
  0x3e   :  { %145 = vperm.xlu1 %1423, %v48_v55   ;;  %97 = vperm.xlu0 %1422, %v32_v56  }
  0x42   :  { %869 = vperm.xlu1 %1423, %v836_v57   ;;  %872 = vperm.xlu0 %1422, %v837_v58  }
  0x46   :  { %875 = vperm.xlu1 %1423, %v838_v59   ;;  %881 = vperm.xlu0 %1422, %v840_v60  }
  0x4a   :  { %878 = vperm.xlu1 %1423, %v839_v61   ;;  %887 = vperm.xlu0 %1422, %v842_v62  }
  0x4e   :  { %884 = vperm.xlu1 %1423, %v841_v63   ;;  %893 = vperm.xlu0 %1422, %v844_v0  }
  0x52   :  { %890 = vperm.xlu1 %1423, %v843_v1   ;;  %899 = vperm.xlu0 %1422, %v846_v2  }
  0x56   :  { %896 = vperm.xlu1 %1423, %v845_v3   ;;  %905 = vperm.xlu0 %1422, %v848_v4  }
  0x5a   :  { %902 = vperm.xlu1 %1423, %v847_v5   ;;  %911 = vperm.xlu0 %1422, %v850_v6  }
  0x5e   :  { %908 = vperm.xlu1 %1423, %v849_v7   ;;  %917 = vperm.xlu0 %1422, %v852_v8  }
  0x62   :  { %914 = vperm.xlu1 %1423, %v851_v9   ;;  %923 = vperm.xlu0 %1422, %v854_v10  }
  0x66   :  { %920 = vperm.xlu1 %1423, %v853_v11   ;;  %929 = vperm.xlu0 %1422, %v856_v12  }
  0x6a   :  { %926 = vperm.xlu1 %1423, %v855_v13   ;;  %935 = vperm.xlu0 %1422, %v858_v14  }
  0x6e   :  { %932 = vperm.xlu1 %1423, %v857_v15   ;;  %941 = vperm.xlu0 %1422, %v860_v16  }
  0x72   :  { %938 = vperm.xlu1 %1423, %v859_v17   ;;  %947 = vperm.xlu0 %1422, %v862_v18  }
  0x76   :  { %944 = vperm.xlu1 %1423, %v861_v19   ;;  %953 = vperm.xlu0 %1422, %v864_v20  }
  0x7a   :  { %950 = vperm.xlu1 %1423, %v863_v21   ;;  %959 = vperm.xlu0 %1422, %v866_v22  }
  0x7e   :  { %956 = vperm.xlu1 %1423, %v865_v24  }
  0x81   :  { %v59_v27 = vpop.permute.xlu1 %58  ;;  %v53_v28 = vpop.permute.xlu0 %52 }
  0x82   :  { %962 = vperm.xlu1 %1423, %v867_v26   ;;  %vm147_vm0 = vcmp.eq.s32.totalorder %v1843_v25, %v53_v28  ;;  %vm149_vm3 = vcmp.eq.s32.totalorder %v1843_v25, %v59_v27 }
  0x83   :  { %1321 = vmatprep.mubr.msk.f32.mxu0 %vm147_vm0, %v1577_v29 }
  0x85   :  { %v101_v30 = vpop.permute.xlu1 %100  ;;  %v56_v31 = vpop.permute.xlu0 %55 }
  0x86   :  { %vm148_vm1 = vcmp.eq.s32.totalorder %v1843_v25, %v56_v31  ;;  %vm163_vm2 = vcmp.eq.s32.totalorder %v1843_v25, %v101_v30 }
  0x87   :  { %1322 = vmatmul.mubr.msk.f32.vlgmr.msra.gmra.mrb[0].mxu0 %vm148_vm1, %v1577_v29  ;;  %1345 = vmatprep.mubr.msk.f32.mxu1 %vm163_vm2, %v1577_v29 }
  0x88   :  { %1324 = vmatprep.mubr.msk.f32.mxu0 %vm149_vm3, %v1577_v29 }
  0x89   :  { %v107_v32 = vpop.permute.xlu1 %106  ;;  %v104_v33 = vpop.permute.xlu0 %103 }
  0x8a   :  { %vm165_vm4 = vcmp.eq.s32.totalorder %v1843_v25, %v107_v32  ;;  %vm164_vm5 = vcmp.eq.s32.totalorder %v1843_v25, %v104_v33 }
  0x8b   :  { %1346 = vmatmul.mubr.msk.f32.vlgmr.msra.gmra.mrb[0].mxu1 %vm164_vm5, %v1577_v29 }
  0x8c   :  { %1348 = vmatprep.mubr.msk.f32.mxu1 %vm165_vm4, %v1577_v29 }
  0x8d   :  { %v110_v34 = vpop.permute.xlu1 %109  ;;  %v62_v35 = vpop.permute.xlu0 %61 }
  0x8e   :  { %vm166_vm6 = vcmp.eq.s32.totalorder %v1843_v25, %v110_v34  ;;  %vm150_vm7 = vcmp.eq.s32.totalorder %v1843_v25, %v62_v35 }
  0x8f   :  { %1325 = vmatmul.mubr.msk.f32.gmra.mrb[2].mxu0 %vm150_vm7, %v1577_v29  ;;  %1349 = vmatmul.mubr.msk.f32.gmra.mrb[2].mxu1 %vm166_vm6, %v1577_v29 }
  0x91   :  { %v113_v36 = vpop.permute.xlu1 %112  ;;  %v65_v37 = vpop.permute.xlu0 %64 }
  0x92   :  { %vm167_vm8 = vcmp.eq.s32.totalorder %v1843_v25, %v113_v36  ;;  %vm151_vm9 = vcmp.eq.s32.totalorder %v1843_v25, %v65_v37 }
  0x93   :  { %1327 = vmatprep.mubr.msk.f32.mxu0 %vm151_vm9, %v1577_v29  ;;  %1351 = vmatprep.mubr.msk.f32.mxu1 %vm167_vm8, %v1577_v29 }
  0x95   :  { %v116_v38 = vpop.permute.xlu1 %115  ;;  %v68_v39 = vpop.permute.xlu0 %67 }
  0x96   :  { %vm168_vm10 = vcmp.eq.s32.totalorder %v1843_v25, %v116_v38  ;;  %vm152_vm11 = vcmp.eq.s32.totalorder %v1843_v25, %v68_v39 }
  0x97   :  { %1328 = vmatmul.mubr.msk.f32.gmra.mrb[4].mxu0 %vm152_vm11, %v1577_v29  ;;  %1352 = vmatmul.mubr.msk.f32.gmra.mrb[4].mxu1 %vm168_vm10, %v1577_v29 }
  0x99   :  { %v119_v40 = vpop.permute.xlu1 %118  ;;  %v71_v41 = vpop.permute.xlu0 %70 }
  0x9a   :  { %vm169_vm12 = vcmp.eq.s32.totalorder %v1843_v25, %v119_v40  ;;  %vm153_vm13 = vcmp.eq.s32.totalorder %v1843_v25, %v71_v41 }
  0x9b   :  { %1330 = vmatprep.mubr.msk.f32.mxu0 %vm153_vm13, %v1577_v29  ;;  %1354 = vmatprep.mubr.msk.f32.mxu1 %vm169_vm12, %v1577_v29 }
  0x9d   :  { %v122_v42 = vpop.permute.xlu1 %121  ;;  %v74_v43 = vpop.permute.xlu0 %73 }
  0x9e   :  { %vm170_vm14 = vcmp.eq.s32.totalorder %v1843_v25, %v122_v42  ;;  %vm154_vm15 = vcmp.eq.s32.totalorder %v1843_v25, %v74_v43 }
  0x9f   :  { %1331 = vmatmul.mubr.msk.f32.gmra.mrb[6].mxu0 %vm154_vm15, %v1577_v29  ;;  %1355 = vmatmul.mubr.msk.f32.gmra.mrb[6].mxu1 %vm170_vm14, %v1577_v29 }
  0xa1   :  { %v125_v44 = vpop.permute.xlu1 %124  ;;  %v77_v45 = vpop.permute.xlu0 %76 }
  0xa2   :  { %vm171_vm0 = vcmp.eq.s32.totalorder %v1843_v25, %v125_v44  ;;  %vm155_vm1 = vcmp.eq.s32.totalorder %v1843_v25, %v77_v45 }
  0xa3   :  { %1333 = vmatprep.mubr.msk.f32.mxu0 %vm155_vm1, %v1577_v29  ;;  %1357 = vmatprep.mubr.msk.f32.mxu1 %vm171_vm0, %v1577_v29 }
  0xa5   :  { %v128_v46 = vpop.permute.xlu1 %127  ;;  %v80_v47 = vpop.permute.xlu0 %79 }
  0xa6   :  { %vm172_vm2 = vcmp.eq.s32.totalorder %v1843_v25, %v128_v46  ;;  %vm156_vm3 = vcmp.eq.s32.totalorder %v1843_v25, %v80_v47 }
  0xa7   :  { %1334 = vmatmul.mubr.msk.f32.gmra.mrb[8].mxu0 %vm156_vm3, %v1577_v29  ;;  %1358 = vmatmul.mubr.msk.f32.gmra.mrb[8].mxu1 %vm172_vm2, %v1577_v29 }
  0xa9   :  { %v131_v48 = vpop.permute.xlu1 %130  ;;  %v83_v49 = vpop.permute.xlu0 %82 }
  0xaa   :  { %vm173_vm4 = vcmp.eq.s32.totalorder %v1843_v25, %v131_v48  ;;  %vm157_vm5 = vcmp.eq.s32.totalorder %v1843_v25, %v83_v49 }
  0xab   :  { %1336 = vmatprep.mubr.msk.f32.mxu0 %vm157_vm5, %v1577_v29  ;;  %1360 = vmatprep.mubr.msk.f32.mxu1 %vm173_vm4, %v1577_v29 }
  0xad   :  { %v134_v50 = vpop.permute.xlu1 %133  ;;  %v86_v51 = vpop.permute.xlu0 %85 }
  0xae   :  { %vm174_vm6 = vcmp.eq.s32.totalorder %v1843_v25, %v134_v50  ;;  %vm158_vm7 = vcmp.eq.s32.totalorder %v1843_v25, %v86_v51 }
  0xaf   :  { %1337 = vmatmul.mubr.msk.f32.gmra.mrb[10].mxu0 %vm158_vm7, %v1577_v29  ;;  %1361 = vmatmul.mubr.msk.f32.gmra.mrb[10].mxu1 %vm174_vm6, %v1577_v29 }
  0xb1   :  { %v137_v52 = vpop.permute.xlu1 %136  ;;  %v89_v53 = vpop.permute.xlu0 %88 }
  0xb2   :  { %vm175_vm8 = vcmp.eq.s32.totalorder %v1843_v25, %v137_v52  ;;  %vm159_vm9 = vcmp.eq.s32.totalorder %v1843_v25, %v89_v53 }
  0xb3   :  { %1339 = vmatprep.mubr.msk.f32.mxu0 %vm159_vm9, %v1577_v29  ;;  %1363 = vmatprep.mubr.msk.f32.mxu1 %vm175_vm8, %v1577_v29 }
  0xb5   :  { %v140_v54 = vpop.permute.xlu1 %139  ;;  %v92_v55 = vpop.permute.xlu0 %91 }
  0xb6   :  { %vm176_vm10 = vcmp.eq.s32.totalorder %v1843_v25, %v140_v54  ;;  %vm160_vm11 = vcmp.eq.s32.totalorder %v1843_v25, %v92_v55 }
  0xb7   :  { %1340 = vmatmul.mubr.msk.f32.gmra.mrb[12].mxu0 %vm160_vm11, %v1577_v29  ;;  %1364 = vmatmul.mubr.msk.f32.gmra.mrb[12].mxu1 %vm176_vm10, %v1577_v29 }
  0xb9   :  { %v143_v56 = vpop.permute.xlu1 %142  ;;  %v95_v57 = vpop.permute.xlu0 %94 }
  0xba   :  { %vm177_vm12 = vcmp.eq.s32.totalorder %v1843_v25, %v143_v56  ;;  %vm161_vm13 = vcmp.eq.s32.totalorder %v1843_v25, %v95_v57 }
  0xbb   :  { %1342 = vmatprep.mubr.msk.f32.mxu0 %vm161_vm13, %v1577_v29  ;;  %1366 = vmatprep.mubr.msk.f32.mxu1 %vm177_vm12, %v1577_v29 }
  0xbd   :  { %v146_v58 = vpop.permute.xlu1 %145  ;;  %v98_v59 = vpop.permute.xlu0 %97 }
  0xbe   :  { %vm178_vm14 = vcmp.eq.s32.totalorder %v1843_v25, %v146_v58  ;;  %vm162_vm15 = vcmp.eq.s32.totalorder %v1843_v25, %v98_v59 }
  0xbf   :  { %1343 = vmatmul.mubr.msk.f32.gmra.mrb[14].mxu0 %vm162_vm15, %v1577_v29  ;;  %1367 = vmatmul.mubr.msk.f32.gmra.mrb[14].mxu1 %vm178_vm14, %v1577_v29 }
  0xc1   :  { %v870_v60 = vpop.permute.xlu1 %869  ;;  %v873_v9 = vpop.permute.xlu0 %872 }
  0xc2   :  { %vm965_vm0 = vcmp.eq.s32.totalorder %v1843_v25, %v873_v9  ;;  %vm964_vm1 = vcmp.eq.s32.totalorder %v1843_v25, %v870_v60 }
  0xc5   :  { %v1912_v61 = vpop.permute.xlu1 %875  ;;  %v882_v23 = vpop.permute.xlu0 %881 }
  0xc6   :  { %vm968_vm2 = vcmp.eq.s32.totalorder %v1843_v25, %v882_v23  ;;  %vm966_vm4 = vcmp.eq.s32.totalorder %v1843_v25, %v1912_v61 }
  0xc9   :  { %v1914_v62 = vpop.permute.xlu1 %878  ;;  %v888_v32 = vpop.permute.xlu0 %887 }
  0xca   :  { %vm967_vm3 = vcmp.eq.s32.totalorder %v1843_v25, %v1914_v62  ;;  %vm970_vm5 = vcmp.eq.s32.totalorder %v1843_v25, %v888_v32 }
  0xcd   :  { %v1916_v63 = vpop.permute.xlu1 %884  ;;  %v894_v47 = vpop.permute.xlu0 %893 }
  0xce   :  { %vm969_vm7 = vcmp.eq.s32.totalorder %v1843_v25, %v1916_v63  ;;  %vm972_vm9 = vcmp.eq.s32.totalorder %v1843_v25, %v894_v47 }
  0xd1   :  { %v1918_v0 = vpop.permute.xlu1 %890  ;;  %v900_v55 = vpop.permute.xlu0 %899 }
  0xd2   :  { %vm971_vm10 = vcmp.eq.s32.totalorder %v1843_v25, %v1918_v0  ;;  %vm974_vm11 = vcmp.eq.s32.totalorder %v1843_v25, %v900_v55 }
  0xd5   :  { %v1920_v1 = vpop.permute.xlu1 %896  ;;  %v906_v62 = vpop.permute.xlu0 %905 }
  0xd6   :  { %vm973_vm12 = vcmp.eq.s32.totalorder %v1843_v25, %v1920_v1  ;;  %vm976_vm14 = vcmp.eq.s32.totalorder %v1843_v25, %v906_v62 }
  0xd9   :  { %v1922_v2 = vpop.permute.xlu1 %902  ;;  %v912_v0 = vpop.permute.xlu0 %911 }
  0xda   :  { %vm975_vm13 = vcmp.eq.s32.totalorder %v1843_v25, %v1922_v2 }
  0xdd   :  { %v1924_v3 = vpop.permute.xlu1 %908  ;;  %v918_v9 = vpop.permute.xlu0 %917 }
  0xde   :  { %vm980_vm15 = vcmp.eq.s32.totalorder %v1843_v25, %v918_v9 }
  0xe1   :  { %v1926_v4 = vpop.permute.xlu1 %914 }
  0xe5   :  { %v1930_v6 = vpop.permute.xlu1 %920 }
  0xe9   :  { %v1945_v11 = vpop.permute.xlu1 %926 }
  0xed   :  { %v1965_v18 = vpop.permute.xlu1 %932 }
  0xf1   :  { %v1983_v24 = vpop.permute.xlu1 %938 }
  0xf5   :  { %v2004_v33 = vpop.permute.xlu1 %944 }
  0xf9   :  { %v951_v39 = vpop.permute.xlu1 %950 }
  0xfa   :  { %vm991_vm6 = vcmp.eq.s32.totalorder %v1843_v25, %v951_v39 }
  0xfd   :  { %v957_v48 = vpop.permute.xlu1 %956 }
  0xfe   :  { %vm993_vm8 = vcmp.eq.s32.totalorder %v1843_v25, %v957_v48 }
 0x101   :  { %v2140_v55 = vpop.permute.xlu1 %962 }
 0x15a   :  { %v1928_v5 = vpop.f32.mrb[0].mxu0 }
 0x15b   :  { %485 = vst [vmem:[#allocation2 + $0x8] sm:$0xff] %v1928_v5  ;;  %518 = vmax.xlane.f32.xlu1 %v1928_v5  ;;  %v1934_v7 = vpop.f32.mrb[1].mxu0  ;;  %v997_v16 = vsel %vm965_vm0, %v1928_v5, 0.0 }
 0x15c   :  { %484 = vst [vmem:[#allocation2] sm:$0xff] %v1934_v7  ;;  %v996_v17 = vsel %vm964_vm1, %v1934_v7, 0.0 }
 0x15e   :  { %v1937_v8 = vpop.f32.mrb[0].mxu1 }
 0x15f   :  { %501 = vst [vmem:[#allocation2 + $0x88] sm:$0xff] %v1937_v8  ;;  %550 = vmax.xlane.f32.xlu0 %v1937_v8  ;;  %v1941_v10 = vpop.f32.mrb[1].mxu1 }
 0x160   :  { %500 = vst [vmem:[#allocation2 + $0x80] sm:$0xff] %v1941_v10  ;;  %548 = vmax.xlane.f32.xlu1 %v1941_v10  ;;  %v1012_v23 = vsel %vm980_vm15, %v1941_v10, 0.0  ;;  %vm995_vm15 = vcmp.eq.s32.totalorder %v1843_v25, %v2140_v55 }
 0x162   :  { %v1947_v12 = vpop.f32.mrb[2].mxu0  ;;  %v1949_v13 = vpop.f32.mrb[2].mxu1 }
 0x163   :  { %487 = vst [vmem:[#allocation2 + $0x18] sm:$0xff] %v1947_v12  ;;  %503 = vst [vmem:[#allocation2 + $0x98] sm:$0xff] %v1949_v13  ;;  %516 = vmax.xlane.f32.xlu0 %v1934_v7  ;;  %v1955_v14 = vpop.f32.mrb[3].mxu0  ;;  %v1957_v15 = vpop.f32.mrb[3].mxu1  ;;  %v999_v31 = vsel %vm967_vm3, %v1947_v12, 0.0  ;;  %vm977_vm3 = vcmp.eq.s32.totalorder %v1843_v25, %v1924_v3 }
 0x164   :  { %486 = vst [vmem:[#allocation2 + $0x10] sm:$0xff] %v1955_v14  ;;  %502 = vst [vmem:[#allocation2 + $0x90] sm:$0xff] %v1957_v15  ;;  %1030 = vadd.xlane.f32.xlu1 %v997_v16  ;;  %v998_v36 = vsel %vm966_vm4, %v1955_v14, 0.0  ;;  %v924_v16 = vpop.permute.xlu0 %923  ;;  %vm978_vm4 = vcmp.eq.s32.totalorder %v1843_v25, %v912_v0 }
 0x165   :  { %vm982_vm0 = vcmp.eq.s32.totalorder %v1843_v25, %v924_v16 }
 0x166   :  { %v1014_v2 = vsel %vm982_vm0, %v1957_v15, 0.0 }
 0x167   :  { %1028 = vadd.xlane.f32.xlu0 %v996_v17 }
 0x168   :  { %552 = vmax.xlane.f32.xlu1 %v1957_v15 }
 0x16a   :  { %v1967_v19 = vpop.f32.mrb[4].mxu0  ;;  %v1969_v20 = vpop.f32.mrb[4].mxu1 }
 0x16b   :  { %489 = vst [vmem:[#allocation2 + $0x28] sm:$0xff] %v1967_v19  ;;  %505 = vst [vmem:[#allocation2 + $0xa8] sm:$0xff] %v1969_v20  ;;  %v1973_v21 = vpop.f32.mrb[5].mxu1  ;;  %522 = vmax.xlane.f32.xlu0 %v1947_v12  ;;  %v1976_v22 = vpop.f32.mrb[5].mxu0  ;;  %v1001_v46 = vsel %vm969_vm7, %v1967_v19, 0.0  ;;  %vm985_vm7 = vcmp.eq.s32.totalorder %v1843_v25, %v1965_v18 }
 0x16c   :  { %504 = vst [vmem:[#allocation2 + $0xa0] sm:$0xff] %v1973_v21  ;;  %488 = vst [vmem:[#allocation2 + $0x20] sm:$0xff] %v1976_v22  ;;  %524 = vmax.xlane.f32.xlu1 %v1976_v22  ;;  %v1000_v30 = vsel %vm968_vm2, %v1976_v22, 0.0  ;;  %v1017_v3 = vsel %vm985_vm7, %v1969_v20, 0.0 }
 0x16f   :  { %554 = vmax.xlane.f32.xlu0 %v1949_v13 }
 0x170   :  { %556 = vmax.xlane.f32.xlu1 %v1973_v21 }
 0x172   :  { %v1985_v26 = vpop.f32.mrb[6].mxu0  ;;  %v1987_v27 = vpop.f32.mrb[6].mxu1 }
 0x173   :  { %491 = vst [vmem:[#allocation2 + $0x38] sm:$0xff] %v1985_v26  ;;  %507 = vst [vmem:[#allocation2 + $0xb8] sm:$0xff] %v1987_v27  ;;  %v1992_v28 = vpop.f32.mrb[7].mxu1  ;;  %520 = vmax.xlane.f32.xlu0 %v1955_v14  ;;  %v1995_v29 = vpop.f32.mrb[7].mxu0  ;;  %v1003_v58 = vsel %vm971_vm10, %v1985_v26, 0.0 }
 0x174   :  { %506 = vst [vmem:[#allocation2 + $0xb0] sm:$0xff] %v1992_v28  ;;  %490 = vst [vmem:[#allocation2 + $0x30] sm:$0xff] %v1995_v29  ;;  %1036 = vadd.xlane.f32.xlu1 %v1000_v30  ;;  %v1002_v40 = vsel %vm970_vm5, %v1995_v29, 0.0  ;;  %v930_v30 = vpop.permute.xlu0 %929  ;;  %vm981_vm5 = vcmp.eq.s32.totalorder %v1843_v25, %v1930_v6 }
 0x175   :  { %vm984_vm1 = vcmp.eq.s32.totalorder %v1843_v25, %v930_v30 }
 0x176   :  { %v1016_v32 = vsel %vm984_vm1, %v1973_v21, 0.0 }
 0x177   :  { %1034 = vadd.xlane.f32.xlu0 %v999_v31 }
 0x178   :  { %528 = vmax.xlane.f32.xlu1 %v1995_v29  ;;  %v936_v31 = vpop.permute.xlu0 %935 }
 0x179   :  { %vm986_vm2 = vcmp.eq.s32.totalorder %v1843_v25, %v936_v31 }
 0x17a   :  { %v2008_v34 = vpop.f32.mrb[8].mxu0  ;;  %v2010_v35 = vpop.f32.mrb[8].mxu1 }
 0x17b   :  { %493 = vst [vmem:[#allocation2 + $0x48] sm:$0xff] %v2008_v34  ;;  %509 = vst [vmem:[#allocation2 + $0xc8] sm:$0xff] %v2010_v35  ;;  %v2015_v37 = vpop.f32.mrb[9].mxu1  ;;  %1032 = vadd.xlane.f32.xlu0 %v998_v36  ;;  %v2017_v38 = vpop.f32.mrb[9].mxu0  ;;  %v1005_v63 = vsel %vm973_vm12, %v2008_v34, 0.0  ;;  %v1018_v36 = vsel %vm986_vm2, %v1992_v28, 0.0 }
 0x17c   :  { %508 = vst [vmem:[#allocation2 + $0xc0] sm:$0xff] %v2015_v37  ;;  %492 = vst [vmem:[#allocation2 + $0x40] sm:$0xff] %v2017_v38  ;;  %560 = vmax.xlane.f32.xlu1 %v1992_v28  ;;  %v1004_v53 = vsel %vm972_vm9, %v2017_v38, 0.0  ;;  %vm979_vm9 = vcmp.eq.s32.totalorder %v1843_v25, %v1926_v4  ;;  %v2134_v48 = vpop.permute.xlu0 %941 }
 0x17d   :  { %vm988_vm10 = vcmp.eq.s32.totalorder %v1843_v25, %v2134_v48 }
 0x17f   :  { %526 = vmax.xlane.f32.xlu0 %v1967_v19 }
 0x180   :  { %1040 = vadd.xlane.f32.xlu1 %v1002_v40 }
 0x182   :  { %v2026_v41 = vpop.f32.mrb[10].mxu0  ;;  %v2028_v42 = vpop.f32.mrb[10].mxu1 }
 0x183   :  { %495 = vst [vmem:[#allocation2 + $0x58] sm:$0xff] %v2026_v41  ;;  %511 = vst [vmem:[#allocation2 + $0xd8] sm:$0xff] %v2028_v42  ;;  %v2032_v43 = vpop.f32.mrb[11].mxu1  ;;  %558 = vmax.xlane.f32.xlu0 %v1969_v20  ;;  %v2035_v44 = vpop.f32.mrb[11].mxu0  ;;  %v2038_v45 = vsel %vm991_vm6, %v2028_v42, 0.0  ;;  %v1007_v1 = vsel %vm975_vm13, %v2026_v41, 0.0  ;;  %vm983_vm6 = vcmp.eq.s32.totalorder %v1843_v25, %v1945_v11 }
 0x184   :  { %510 = vst [vmem:[#allocation2 + $0xd0] sm:$0xff] %v2032_v43  ;;  %494 = vst [vmem:[#allocation2 + $0x50] sm:$0xff] %v2035_v44  ;;  %532 = vmax.xlane.f32.xlu1 %v2017_v38  ;;  %v1006_v61 = vsel %vm974_vm11, %v2035_v44, 0.0  ;;  %v1015_v47 = vsel %vm983_vm6, %v1949_v13, 0.0 }
 0x187   :  { %1038 = vadd.xlane.f32.xlu0 %v1001_v46  ;;  %v1013_v46 = vsel %vm981_vm5, %v1937_v8, 0.0 }
 0x188   :  { %564 = vmax.xlane.f32.xlu1 %v2015_v37 }
 0x18a   :  { %v2048_v49 = vpop.f32.mrb[12].mxu0  ;;  %v2050_v50 = vpop.f32.mrb[12].mxu1 }
 0x18b   :  { %497 = vst [vmem:[#allocation2 + $0x68] sm:$0xff] %v2048_v49  ;;  %513 = vst [vmem:[#allocation2 + $0xe8] sm:$0xff] %v2050_v50  ;;  %v2055_v51 = vpop.f32.mrb[13].mxu1  ;;  %530 = vmax.xlane.f32.xlu0 %v1985_v26  ;;  %v2058_v52 = vpop.f32.mrb[13].mxu0  ;;  %v2062_v54 = vsel %vm993_vm8, %v2050_v50, 0.0  ;;  %v1009_v39 = vsel %vm977_vm3, %v2048_v49, 0.0  ;;  %vm987_vm8 = vcmp.eq.s32.totalorder %v1843_v25, %v1983_v24 }
 0x18c   :  { %512 = vst [vmem:[#allocation2 + $0xe0] sm:$0xff] %v2055_v51  ;;  %496 = vst [vmem:[#allocation2 + $0x60] sm:$0xff] %v2058_v52  ;;  %1044 = vadd.xlane.f32.xlu1 %v1004_v53  ;;  %v1008_v17 = vsel %vm976_vm14, %v2058_v52, 0.0  ;;  %v1019_v6 = vsel %vm987_vm8, %v1987_v27, 0.0  ;;  %v2136_v53 = vpop.permute.xlu0 %947  ;;  %vm989_vm14 = vcmp.eq.s32.totalorder %v1843_v25, %v2004_v33 }
 0x18d   :  { %vm990_vm11 = vcmp.eq.s32.totalorder %v1843_v25, %v2136_v53 }
 0x18f   :  { %562 = vmax.xlane.f32.xlu0 %v1987_v27 }
 0x190   :  { %536 = vmax.xlane.f32.xlu1 %v2035_v44  ;;  %v2138_v18 = vpop.permute.xlu0 %953 }
 0x191   :  { %vm992_vm12 = vcmp.eq.s32.totalorder %v1843_v25, %v2138_v18 }
 0x192   :  { %v2070_v56 = vpop.f32.mrb[14].mxu0  ;;  %v2072_v57 = vpop.f32.mrb[14].mxu1 }
 0x193   :  { %499 = vst [vmem:[#allocation2 + $0x78] sm:$0xff] %v2070_v56  ;;  %515 = vst [vmem:[#allocation2 + $0xf8] sm:$0xff] %v2072_v57  ;;  %v2077_v59 = vpop.f32.mrb[15].mxu1  ;;  %1042 = vadd.xlane.f32.xlu0 %v1003_v58  ;;  %v2079_v60 = vpop.f32.mrb[15].mxu0  ;;  %v1011_v11 = vsel %vm979_vm9, %v2070_v56, 0.0 }
 0x194   :  { %514 = vst [vmem:[#allocation2 + $0xf0] sm:$0xff] %v2077_v59  ;;  %498 = vst [vmem:[#allocation2 + $0x70] sm:$0xff] %v2079_v60  ;;  %568 = vmax.xlane.f32.xlu1 %v2032_v43  ;;  %v1010_v40 = vsel %vm978_vm4, %v2079_v60, 0.0  ;;  %v2142_v58 = vpop.permute.xlu0 %959 }
 0x195   :  { %vm994_vm13 = vcmp.eq.s32.totalorder %v1843_v25, %v2142_v58 }
 0x196   :  { %v1026_v53 = vsel %vm994_vm13, %v2077_v59, 0.0 }
 0x197   :  { %534 = vmax.xlane.f32.xlu0 %v2008_v34 }
 0x198   :  { %1048 = vadd.xlane.f32.xlu1 %v1006_v61 }
 0x19b   :  { %566 = vmax.xlane.f32.xlu0 %v2010_v35 }
 0x19c   :  { %540 = vmax.xlane.f32.xlu1 %v2058_v52 }
 0x19f   :  { %1046 = vadd.xlane.f32.xlu0 %v1005_v63 }
 0x1a0   :  { %572 = vmax.xlane.f32.xlu1 %v2055_v51 }
 0x1a3   :  { %538 = vmax.xlane.f32.xlu0 %v2026_v41 }
 0x1a4   :  { %544 = vmax.xlane.f32.xlu1 %v2079_v60 }
 0x1a7   :  { %570 = vmax.xlane.f32.xlu0 %v2028_v42 }
 0x1a8   :  { %576 = vmax.xlane.f32.xlu1 %v2077_v59 }
 0x1ab   :  { %1050 = vadd.xlane.f32.xlu0 %v1007_v1 }
 0x1ac   :  { %1052 = vadd.xlane.f32.xlu1 %v1008_v17 }
 0x1af   :  { %542 = vmax.xlane.f32.xlu0 %v2048_v49 }
 0x1b0   :  { %1060 = vadd.xlane.f32.xlu1 %v1012_v23 }
 0x1b3   :  { %574 = vmax.xlane.f32.xlu0 %v2050_v50 }
 0x1b4   :  { %1064 = vadd.xlane.f32.xlu1 %v1014_v2 }
 0x1b7   :  { %546 = vmax.xlane.f32.xlu0 %v2070_v56 }
 0x1b8   :  { %1068 = vadd.xlane.f32.xlu1 %v1016_v32 }
 0x1bb   :  { %578 = vmax.xlane.f32.xlu0 %v2072_v57 }
 0x1bc   :  { %1072 = vadd.xlane.f32.xlu1 %v1018_v36 }
 0x1bf   :  { %1054 = vadd.xlane.f32.xlu0 %v1009_v39 }
 0x1c0   :  { %1056 = vadd.xlane.f32.xlu1 %v1010_v40 }
 0x1c3   :  { %1062 = vadd.xlane.f32.xlu0 %v1013_v46 }
 0x1c7   :  { %1066 = vadd.xlane.f32.xlu0 %v1015_v47 }
 0x1cb   :  { %1070 = vadd.xlane.f32.xlu0 %v1017_v3 }
 0x1cf   :  { %1074 = vadd.xlane.f32.xlu0 %v1019_v6 }
 0x1d3   :  { %1058 = vadd.xlane.f32.xlu0 %v1011_v11 }
 0x1e8   :  { %v2144_v24 = vpop.xlane.xlu1 %518 }
 0x1e9   :  { %v581_v61 = vsub.f32 %v1928_v5, %v2144_v24 }
 0x1eb   :  { %v614_v62 = vmul.f32 1.442695, %v581_v61 }
 0x1ec   :  { %v2148_v4 = vpop.xlane.xlu0 %550 }
 0x1ed   :  { %1424 = vpow2.f32 %v614_v62  ;;  %v597_v63 = vsub.f32 %v1937_v8, %v2148_v4  ;;  %v2152_v0 = vpop.xlane.xlu1 %548 }
 0x1ee   :  { %v596_v16 = vsub.f32 %v1941_v10, %v2152_v0 }
 0x1ef   :  { %v646_v9 = vmul.f32 1.442695, %v597_v63 }
 0x1f0   :  { %v2154_v1 = vpop.xlane.xlu0 %516  ;;  %v644_v2 = vmul.f32 1.442695, %v596_v16 }
 0x1f1   :  { %1426 = vpow2.f32 %v646_v9  ;;  %v580_v17 = vsub.f32 %v1934_v7, %v2154_v1  ;;  %v2160_v5 = vpop.xlane.xlu1 %1030 }
 0x1f3   :  { %v612_v23 = vmul.f32 1.442695, %v580_v17 }
 0x1f4   :  { %v2162_v30 = vpop.xlane.xlu0 %1028 }
 0x1f5   :  { %1428 = vpow2.f32 %v612_v23  ;;  %v2164_v8 = vpop.xlane.xlu1 %552 }
 0x1f6   :  { %1430 = vpow2.f32 %v644_v2 }
 0x1f7   :  { %v1425_v31 = vpop.eup %1424 }
 0x1f8   :  { %678 = vadd.xlane.f32.xlu0 %v1425_v31  ;;  %v2166_v32 = vpop.xlane.xlu0 %522 }
 0x1f9   :  { %v583_v10 = vsub.f32 %v1947_v12, %v2166_v32  ;;  %v2170_v36 = vpop.xlane.xlu1 %524  ;;  %v598_v12 = vsub.f32 %v1957_v15, %v2164_v8 }
 0x1fa   :  { %v584_v17 = vsub.f32 %v1976_v22, %v2170_v36 }
 0x1fb   :  { %v1427_v7 = vpop.eup %1426  ;;  %v618_v39 = vmul.f32 1.442695, %v583_v10  ;;  %v648_v16 = vmul.f32 1.442695, %v598_v12 }
 0x1fc   :  { %710 = vadd.xlane.f32.xlu0 %v1427_v7  ;;  %v2172_v40 = vpop.xlane.xlu0 %554  ;;  %v620_v31 = vmul.f32 1.442695, %v584_v17 }
 0x1fd   :  { %1432 = vpow2.f32 %v618_v39  ;;  %v599_v46 = vsub.f32 %v1949_v13, %v2172_v40  ;;  %v2176_v47 = vpop.xlane.xlu1 %556 }
 0x1fe   :  { %v600_v15 = vsub.f32 %v1973_v21, %v2176_v47 }
 0x1ff   :  { %v1429_v3 = vpop.eup %1428  ;;  %v650_v6 = vmul.f32 1.442695, %v599_v46 }
 0x200   :  { %676 = vadd.xlane.f32.xlu1 %v1429_v3  ;;  %v2178_v11 = vpop.xlane.xlu0 %520  ;;  %v1431_v63 = vpop.eup %1430  ;;  %v652_v39 = vmul.f32 1.442695, %v600_v15 }
 0x201   :  { %1434 = vpow2.f32 %v650_v6  ;;  %v582_v61 = vsub.f32 %v1955_v14, %v2178_v11  ;;  %v2184_v62 = vpop.xlane.xlu1 %1036 }
 0x203   :  { %v616_v9 = vmul.f32 1.442695, %v582_v61 }
 0x204   :  { %708 = vadd.xlane.f32.xlu1 %v1431_v63  ;;  %v2186_v13 = vpop.xlane.xlu0 %1034 }
 0x205   :  { %1436 = vpow2.f32 %v616_v9  ;;  %v2190_v23 = vpop.xlane.xlu1 %528 }
 0x206   :  { %1438 = vpow2.f32 %v648_v16  ;;  %v586_v46 = vsub.f32 %v1995_v29, %v2190_v23 }
 0x207   :  { %v1433_v2 = vpop.eup %1432  ;;  %1440 = vpow2.f32 %v620_v31 }
 0x208   :  { %682 = vadd.xlane.f32.xlu0 %v1433_v2  ;;  %v2194_v14 = vpop.xlane.xlu0 %1032  ;;  %1442 = vpow2.f32 %v652_v39  ;;  %v624_v61 = vmul.f32 1.442695, %v586_v46 }
 0x209   :  { %v2196_v10 = vpop.xlane.xlu1 %560 }
 0x20a   :  { %v602_v9 = vsub.f32 %v1992_v28, %v2196_v10 }
 0x20b   :  { %v1435_v7 = vpop.eup %1434 }
 0x20c   :  { %714 = vadd.xlane.f32.xlu0 %v1435_v7  ;;  %v2200_v22 = vpop.xlane.xlu0 %526  ;;  %v656_v31 = vmul.f32 1.442695, %v602_v9 }
 0x20d   :  { %v585_v3 = vsub.f32 %v1967_v19, %v2200_v22  ;;  %v2204_v21 = vpop.xlane.xlu1 %1040 }
 0x20f   :  { %v1437_v6 = vpop.eup %1436  ;;  %v622_v12 = vmul.f32 1.442695, %v585_v3 }
 0x210   :  { %680 = vadd.xlane.f32.xlu1 %v1437_v6  ;;  %v2206_v63 = vpop.xlane.xlu0 %558  ;;  %v1439_v17 = vpop.eup %1438 }
 0x211   :  { %1444 = vpow2.f32 %v622_v12  ;;  %v601_v29 = vsub.f32 %v1969_v20, %v2206_v63  ;;  %v2212_v16 = vpop.xlane.xlu1 %532  ;;  %v1441_v28 = vpop.eup %1440 }
 0x212   :  { %1446 = vpow2.f32 %v624_v61  ;;  %v588_v2 = vsub.f32 %v2017_v38, %v2212_v16  ;;  %v1443_v6 = vpop.eup %1442 }
 0x213   :  { %v654_v19 = vmul.f32 1.442695, %v601_v29 }
 0x214   :  { %712 = vadd.xlane.f32.xlu1 %v1439_v17  ;;  %v2216_v15 = vpop.xlane.xlu0 %1038  ;;  %v628_v39 = vmul.f32 1.442695, %v588_v2 }
 0x215   :  { %1448 = vpow2.f32 %v654_v19  ;;  %v2218_v7 = vpop.xlane.xlu1 %564 }
 0x216   :  { %2544 = vst [vmem:[#allocation5_spill] sm:$0xff] %v2218_v7  ;;  %v604_v20 = vsub.f32 %v2015_v37, %v2218_v7  ;;  %1450 = vpow2.f32 %v656_v31 }
 0x217   :  { %1452 = vpow2.f32 %v628_v39 }
 0x218   :  { %684 = vadd.xlane.f32.xlu1 %v1441_v28  ;;  %v2222_v46 = vpop.xlane.xlu0 %530  ;;  %v660_v9 = vmul.f32 1.442695, %v604_v20 }
 0x219   :  { %v587_v3 = vsub.f32 %v1985_v26, %v2222_v46  ;;  %v2226_v38 = vpop.xlane.xlu1 %1044 }
 0x21b   :  { %v1445_v12 = vpop.eup %1444  ;;  %v626_v61 = vmul.f32 1.442695, %v587_v3 }
 0x21c   :  { %716 = vadd.xlane.f32.xlu1 %v1443_v6  ;;  %686 = vadd.xlane.f32.xlu0 %v1445_v12  ;;  %v2228_v29 = vpop.xlane.xlu0 %562  ;;  %v1447_v2 = vpop.eup %1446 }
 0x21d   :  { %1454 = vpow2.f32 %v626_v61  ;;  %v603_v17 = vsub.f32 %v1987_v27, %v2228_v29  ;;  %v2232_v19 = vpop.xlane.xlu1 %536 }
 0x21e   :  { %v590_v26 = vsub.f32 %v2035_v44, %v2232_v19  ;;  %1456 = vpow2.f32 %v660_v9 }
 0x21f   :  { %v1449_v31 = vpop.eup %1448  ;;  %v658_v28 = vmul.f32 1.442695, %v603_v17 }
 0x220   :  { %688 = vadd.xlane.f32.xlu1 %v1447_v2  ;;  %718 = vadd.xlane.f32.xlu0 %v1449_v31  ;;  %v2236_v39 = vpop.xlane.xlu0 %1042  ;;  %v632_v20 = vmul.f32 1.442695, %v590_v26  ;;  %v1451_v6 = vpop.eup %1450 }
 0x221   :  { %1458 = vpow2.f32 %v658_v28  ;;  %v2238_v3 = vpop.xlane.xlu1 %568  ;;  %v1453_v17 = vpop.eup %1452 }
 0x222   :  { %2545 = vst [vmem:[#allocation6_spill] sm:$0xff] %v2238_v3  ;;  %v606_v27 = vsub.f32 %v2032_v43, %v2238_v3  ;;  %1460 = vpow2.f32 %v632_v20 }
 0x224   :  { %v664_v12 = vmul.f32 1.442695, %v606_v27  ;;  %720 = vadd.xlane.f32.xlu1 %v1451_v6  ;;  %v2242_v61 = vpop.xlane.xlu0 %534 }
 0x225   :  { %v589_v44 = vsub.f32 %v2008_v34, %v2242_v61  ;;  %v2246_v9 = vpop.xlane.xlu1 %1048 }
 0x226   :  { %1462 = vpow2.f32 %v664_v12 }
 0x227   :  { %v1455_v2 = vpop.eup %1454  ;;  %v630_v31 = vmul.f32 1.442695, %v589_v44 }
 0x228   :  { %692 = vadd.xlane.f32.xlu1 %v1453_v17  ;;  %690 = vadd.xlane.f32.xlu0 %v1455_v2  ;;  %v2248_v26 = vpop.xlane.xlu0 %566  ;;  %v1457_v20 = vpop.eup %1456 }
 0x229   :  { %2546 = vst [vmem:[#allocation7_spill] sm:$0xff] %v2248_v26  ;;  %1464 = vpow2.f32 %v630_v31  ;;  %v605_v28 = vsub.f32 %v2010_v35, %v2248_v26  ;;  %v2252_v27 = vpop.xlane.xlu1 %540 }
 0x22a   :  { %v592_v34 = vsub.f32 %v2058_v52, %v2252_v27 }
 0x22b   :  { %v1459_v6 = vpop.eup %1458  ;;  %v662_v3 = vmul.f32 1.442695, %v605_v28 }
 0x22c   :  { %v636_v7 = vmul.f32 1.442695, %v592_v34  ;;  %724 = vadd.xlane.f32.xlu1 %v1457_v20  ;;  %722 = vadd.xlane.f32.xlu0 %v1459_v6  ;;  %v2256_v12 = vpop.xlane.xlu0 %1046  ;;  %v1461_v2 = vpop.eup %1460 }
 0x22d   :  { %1466 = vpow2.f32 %v662_v3  ;;  %v2258_v44 = vpop.xlane.xlu1 %572 }
 0x22e   :  { %2547 = vst [vmem:[#allocation8_spill] sm:$0xff] %v2258_v44  ;;  %1468 = vpow2.f32 %v636_v7  ;;  %v608_v17 = vsub.f32 %v2055_v51, %v2258_v44 }
 0x230   :  { %v668_v31 = vmul.f32 1.442695, %v608_v17  ;;  %696 = vadd.xlane.f32.xlu1 %v1461_v2  ;;  %v2262_v26 = vpop.xlane.xlu0 %538  ;;  %v1463_v20 = vpop.eup %1462 }
 0x231   :  { %2548 = vst [vmem:[#allocation9_spill] sm:$0xff] %v2262_v26  ;;  %v591_v52 = vsub.f32 %v2026_v41, %v2262_v26  ;;  %v2266_v28 = vpop.xlane.xlu1 %544 }
 0x232   :  { %2549 = vst [vmem:[#allocation10_spill] sm:$0xff] %v2266_v28  ;;  %1470 = vpow2.f32 %v668_v31  ;;  %v594_v3 = vsub.f32 %v2079_v60, %v2266_v28 }
 0x233   :  { %v1465_v34 = vpop.eup %1464  ;;  %v634_v7 = vmul.f32 1.442695, %v591_v52 }
 0x234   :  { %v640_v6 = vmul.f32 1.442695, %v594_v3  ;;  %728 = vadd.xlane.f32.xlu1 %v1463_v20  ;;  %694 = vadd.xlane.f32.xlu0 %v1465_v34  ;;  %v2270_v44 = vpop.xlane.xlu0 %570 }
 0x235   :  { %1472 = vpow2.f32 %v634_v7  ;;  %v607_v17 = vsub.f32 %v2028_v42, %v2270_v44  ;;  %v2274_v2 = vpop.xlane.xlu1 %576 }
 0x236   :  { %1474 = vpow2.f32 %v640_v6  ;;  %v610_v41 = vsub.f32 %v2077_v59, %v2274_v2  ;;  %v1027_v59 = vsel %vm995_vm15, %v2072_v57, 0.0 }
 0x237   :  { %v1467_v31 = vpop.eup %1466  ;;  %v666_v26 = vmul.f32 1.442695, %v607_v17 }
 0x238   :  { %v1469_v60 = vpop.eup %1468  ;;  %v672_v28 = vmul.f32 1.442695, %v610_v41  ;;  %726 = vadd.xlane.f32.xlu0 %v1467_v31  ;;  %v2278_v52 = vpop.xlane.xlu0 %1050 }
 0x239   :  { %1476 = vpow2.f32 %v666_v26  ;;  %700 = vadd.xlane.f32.xlu1 %v1469_v60  ;;  %v2318_v58 = vpop.xlane.xlu1 %1052 }
 0x23a   :  { %1478 = vpow2.f32 %v672_v28 }
 0x23c   :  { %v1471_v20 = vpop.eup %1470  ;;  %v2280_v3 = vpop.xlane.xlu0 %542 }
 0x23d   :  { %v593_v42 = vsub.f32 %v2048_v49, %v2280_v3  ;;  %732 = vadd.xlane.f32.xlu1 %v1471_v20  ;;  %v2322_v33 = vpop.xlane.xlu1 %1060 }
 0x23f   :  { %v1473_v34 = vpop.eup %1472  ;;  %v638_v7 = vmul.f32 1.442695, %v593_v42 }
 0x240   :  { %v1475_v6 = vpop.eup %1474  ;;  %698 = vadd.xlane.f32.xlu0 %v1473_v34  ;;  %v2284_v17 = vpop.xlane.xlu0 %574 }
 0x241   :  { %1480 = vpow2.f32 %v638_v7  ;;  %v609_v41 = vsub.f32 %v2050_v50, %v2284_v17  ;;  %704 = vadd.xlane.f32.xlu1 %v1475_v6  ;;  %v1020_v50 = vsel %vm988_vm10, %v2015_v37, 0.0  ;;  %v1024_v37 = vsel %vm992_vm12, %v2055_v51, 0.0 }
 0x243   :  { %v1477_v26 = vpop.eup %1476  ;;  %v670_v28 = vmul.f32 1.442695, %v609_v41 }
 0x244   :  { %v1479_v31 = vpop.eup %1478  ;;  %730 = vadd.xlane.f32.xlu0 %v1477_v26  ;;  %v2288_v60 = vpop.xlane.xlu0 %546 }
 0x245   :  { %1482 = vpow2.f32 %v670_v28  ;;  %v595_v49 = vsub.f32 %v2070_v56, %v2288_v60  ;;  %736 = vadd.xlane.f32.xlu1 %v1479_v31  ;;  %v1022_v56 = vsel %vm990_vm11, %v2032_v43, 0.0  ;;  %v1021_v43 = vsel %vm989_vm14, %v2010_v35, 0.0 }
 0x247   :  { %v642_v20 = vmul.f32 1.442695, %v595_v49 }
 0x248   :  { %v2294_v42 = vpop.xlane.xlu0 %578 }
 0x249   :  { %1484 = vpow2.f32 %v642_v20  ;;  %v611_v34 = vsub.f32 %v2072_v57, %v2294_v42  ;;  %1076 = vadd.xlane.f32.xlu1 %v1020_v50 }
 0x24b   :  { %v1481_v7 = vpop.eup %1480  ;;  %v674_v6 = vmul.f32 1.442695, %v611_v34 }
 0x24c   :  { %702 = vadd.xlane.f32.xlu0 %v1481_v7  ;;  %v2312_v51 = vpop.xlane.xlu0 %1054 }
 0x24d   :  { %1486 = vpow2.f32 %v674_v6  ;;  %1080 = vadd.xlane.f32.xlu1 %v1022_v56 }
 0x24f   :  { %v1483_v48 = vpop.eup %1482 }
 0x250   :  { %734 = vadd.xlane.f32.xlu0 %v1483_v48  ;;  %v1063_v18 = vpop.xlane.xlu0 %1062 }
 0x251   :  { %1084 = vadd.xlane.f32.xlu1 %v1024_v37 }
 0x253   :  { %v1485_v41 = vpop.eup %1484 }
 0x254   :  { %706 = vadd.xlane.f32.xlu0 %v1485_v41  ;;  %v2320_v28 = vpop.xlane.xlu0 %1066 }
 0x255   :  { %1088 = vadd.xlane.f32.xlu1 %v1026_v53 }
 0x257   :  { %v1487_v26 = vpop.eup %1486 }
 0x258   :  { %738 = vadd.xlane.f32.xlu0 %v1487_v26  ;;  %v2324_v35 = vpop.xlane.xlu0 %1070 }
 0x25c   :  { %1078 = vadd.xlane.f32.xlu0 %v1021_v43 }
 0x260   :  { %1082 = vadd.xlane.f32.xlu0 %v2038_v45  ;;  %v2326_v45 = vpop.xlane.xlu1 %1064 }
 0x264   :  { %1086 = vadd.xlane.f32.xlu0 %v2062_v54 }
 0x268   :  { %1090 = vadd.xlane.f32.xlu0 %v1027_v59 }
 0x269   :  { %1563 = shalt.err (!%p1560_p4)
}
 0x26a   :  { %s1564_s2 = scalar_lea.hbm %s2536_s3, 4096 }
 0x26b   :  { %p1565_p5 = scmp.ne.s32.totalorder %s2536_s3, %s1564_s2  ;;  %p1568_p6 = scmp.lt.u32.totalorder %s1564_s2, %s2536_s3 }
 0x26d   :  { %p1570_p7 = pnand %p1568_p6, %p1565_p5 }
 0x26f   :  { %1573 = shalt.err (!%p1570_p7)
}
 0x270   :  { %s1579_s21 = smov 128   ;;  %s1580_s22 = smov 8   ;;  %v2340_v25 = vpop.xlane.xlu0 %1074  ;;  %v2342_v54 = vpop.xlane.xlu1 %1068  ;;  %vm1124_vm0 = vcmask 7168  }
 0x271   :  { %1168 = dma.vmem_to_hbm [thread:$0]  %s1163_s0, 4096, %s2536_s3, [#allocation3], %s1579_s21, %s1579_s21, %s1580_s22  }
 0x274   :  { %v2344_v57 = vpop.xlane.xlu0 %1058  ;;  %v2346_v55 = vpop.xlane.xlu1 %1072 }
 0x278   :  { %v2348_v49 = vpop.xlane.xlu1 %1056 }
 0x285   :  { %v679_v31 = vpop.xlane.xlu0 %678 }
 0x286   :  { %1488 = vlog2.f32 %v679_v31 }
 0x289   :  { %v711_v20 = vpop.xlane.xlu0 %710 }
 0x28a   :  { %1490 = vlog2.f32 %v711_v20 }
 0x28d   :  { %v677_v50 = vpop.xlane.xlu1 %676 }
 0x28e   :  { %1492 = vlog2.f32 %v677_v50 }
 0x290   :  { %v1489_v34 = vpop.eup %1488 }
 0x291   :  { %v743_v7 = vmul.f32 0.6931472, %v1489_v34  ;;  %v709_v6 = vpop.xlane.xlu1 %708 }
 0x292   :  { %1494 = vlog2.f32 %v709_v6 }
 0x293   :  { %v805_v56 = vadd.f32 %v743_v7, %v2144_v24 }
 0x294   :  { %v1491_v48 = vpop.eup %1490 }
 0x295   :  { %v1093_v37 = vsub.f32 %v805_v56, %v2160_v5  ;;  %v775_v41 = vmul.f32 0.6931472, %v1491_v48  ;;  %v683_v53 = vpop.xlane.xlu0 %682 }
 0x296   :  { %1496 = vlog2.f32 %v683_v53 }
 0x297   :  { %1126 = vst.msk [vmem:[%s2537_s4 + $0x8] sm:$0xff] %vm1124_vm0, %v1093_v37  ;;  %v821_v26 = vadd.f32 %v775_v41, %v2148_v4 }
 0x298   :  { %v1493_v43 = vpop.eup %1492 }
 0x299   :  { %v1109_v59 = vsub.f32 %v821_v26, %v1063_v18  ;;  %v741_v31 = vmul.f32 0.6931472, %v1493_v43  ;;  %v715_v20 = vpop.xlane.xlu0 %714 }
 0x29a   :  { %1498 = vlog2.f32 %v715_v20 }
 0x29b   :  { %1142 = vst.msk [vmem:[%s2537_s4 + $0x88] sm:$0xff] %vm1124_vm0, %v1109_v59  ;;  %v804_v24 = vadd.f32 %v741_v31, %v2154_v1 }
 0x29c   :  { %v1495_v5 = vpop.eup %1494 }
 0x29d   :  { %v1092_v50 = vsub.f32 %v804_v24, %v2162_v30  ;;  %v773_v34 = vmul.f32 0.6931472, %v1495_v5  ;;  %v681_v7 = vpop.xlane.xlu1 %680 }
 0x29e   :  { %1500 = vlog2.f32 %v681_v7 }
 0x29f   :  { %1125 = vst.msk [vmem:[%s2537_s4] sm:$0xff] %vm1124_vm0, %v1092_v50  ;;  %v820_v4 = vadd.f32 %v773_v34, %v2152_v0 }
 0x2a0   :  { %v1497_v18 = vpop.eup %1496 }
 0x2a1   :  { %v1108_v6 = vsub.f32 %v820_v4, %v2322_v33  ;;  %v747_v56 = vmul.f32 0.6931472, %v1497_v18  ;;  %v713_v48 = vpop.xlane.xlu1 %712 }
 0x2a2   :  { %1502 = vlog2.f32 %v713_v48 }
 0x2a3   :  { %1141 = vst.msk [vmem:[%s2537_s4 + $0x80] sm:$0xff] %vm1124_vm0, %v1108_v6  ;;  %v807_v1 = vadd.f32 %v747_v56, %v2166_v32 }
 0x2a4   :  { %v1499_v30 = vpop.eup %1498 }
 0x2a5   :  { %v1095_v37 = vsub.f32 %v807_v1, %v2186_v13  ;;  %v779_v41 = vmul.f32 0.6931472, %v1499_v30  ;;  %v685_v53 = vpop.xlane.xlu1 %684 }
 0x2a6   :  { %1504 = vlog2.f32 %v685_v53 }
 0x2a7   :  { %1128 = vst.msk [vmem:[%s2537_s4 + $0x18] sm:$0xff] %vm1124_vm0, %v1095_v37  ;;  %v823_v0 = vadd.f32 %v779_v41, %v2172_v40 }
 0x2a8   :  { %v1501_v33 = vpop.eup %1500 }
 0x2a9   :  { %v1111_v26 = vsub.f32 %v823_v0, %v2320_v28  ;;  %v745_v43 = vmul.f32 0.6931472, %v1501_v33  ;;  %v717_v59 = vpop.xlane.xlu1 %716  ;;  %v687_v31 = vpop.xlane.xlu0 %686 }
 0x2aa   :  { %1506 = vlog2.f32 %v717_v59 }
 0x2ab   :  { %1144 = vst.msk [vmem:[%s2537_s4 + $0x98] sm:$0xff] %vm1124_vm0, %v1111_v26  ;;  %v806_v32 = vadd.f32 %v745_v43, %v2178_v11  ;;  %1508 = vlog2.f32 %v687_v31 }
 0x2ac   :  { %v1503_v13 = vpop.eup %1502 }
 0x2ad   :  { %v1094_v20 = vsub.f32 %v806_v32, %v2194_v14  ;;  %v777_v24 = vmul.f32 0.6931472, %v1503_v13  ;;  %v689_v40 = vpop.xlane.xlu1 %688  ;;  %v719_v5 = vpop.xlane.xlu0 %718 }
 0x2ae   :  { %1510 = vlog2.f32 %v689_v40 }
 0x2af   :  { %1127 = vst.msk [vmem:[%s2537_s4 + $0x10] sm:$0xff] %vm1124_vm0, %v1094_v20  ;;  %v822_v28 = vadd.f32 %v777_v24, %v2164_v8  ;;  %1512 = vlog2.f32 %v719_v5 }
 0x2b0   :  { %v1505_v50 = vpop.eup %1504 }
 0x2b1   :  { %v1110_v34 = vsub.f32 %v822_v28, %v2326_v45  ;;  %v749_v11 = vmul.f32 0.6931472, %v1505_v50  ;;  %v721_v7 = vpop.xlane.xlu1 %720 }
 0x2b2   :  { %1514 = vlog2.f32 %v721_v7 }
 0x2b3   :  { %1143 = vst.msk [vmem:[%s2537_s4 + $0x90] sm:$0xff] %vm1124_vm0, %v1110_v34  ;;  %v808_v14 = vadd.f32 %v749_v11, %v2170_v36 }
 0x2b4   :  { %v1507_v4 = vpop.eup %1506 }
 0x2b5   :  { %v1509_v18 = vpop.eup %1508  ;;  %v1096_v6 = vsub.f32 %v808_v14, %v2184_v62  ;;  %v781_v56 = vmul.f32 0.6931472, %v1507_v4  ;;  %v693_v8 = vpop.xlane.xlu1 %692 }
 0x2b6   :  { %v691_v48 = vpop.xlane.xlu0 %690  ;;  %v751_v1 = vmul.f32 0.6931472, %v1509_v18  ;;  %1516 = vlog2.f32 %v693_v8 }
 0x2b7   :  { %1129 = vst.msk [vmem:[%s2537_s4 + $0x20] sm:$0xff] %vm1124_vm0, %v1096_v6  ;;  %v824_v45 = vadd.f32 %v781_v56, %v2176_v47  ;;  %1518 = vlog2.f32 %v691_v48 }
 0x2b8   :  { %v1511_v30 = vpop.eup %1510  ;;  %v809_v36 = vadd.f32 %v751_v1, %v2200_v22 }
 0x2b9   :  { %v1513_v37 = vpop.eup %1512  ;;  %v1112_v41 = vsub.f32 %v824_v45, %v2342_v54  ;;  %v753_v62 = vmul.f32 0.6931472, %v1511_v30  ;;  %v725_v53 = vpop.xlane.xlu1 %724 }
 0x2ba   :  { %v723_v0 = vpop.xlane.xlu0 %722  ;;  %v1097_v33 = vsub.f32 %v809_v36, %v2216_v15  ;;  %v783_v26 = vmul.f32 0.6931472, %v1513_v37 }
 0x2bb   :  { %1145 = vst.msk [vmem:[%s2537_s4 + $0xa0] sm:$0xff] %vm1124_vm0, %v1112_v41  ;;  %v810_v47 = vadd.f32 %v753_v62, %v2190_v23  ;;  %1520 = vlog2.f32 %v723_v0  ;;  %v2550_v62 = vld [vmem:[#allocation5_spill] sm:$0xff] }
 0x2bc   :  { %v1515_v43 = vpop.eup %1514  ;;  %1130 = vst.msk [vmem:[%s2537_s4 + $0x28] sm:$0xff] %vm1124_vm0, %v1097_v33  ;;  %v825_v22 = vadd.f32 %v783_v26, %v2206_v63 }
 0x2bd   :  { %v1098_v54 = vsub.f32 %v810_v47, %v2204_v21  ;;  %v785_v15 = vmul.f32 0.6931472, %v1515_v43  ;;  %v697_v59 = vpop.xlane.xlu1 %696 }
 0x2be   :  { %v1113_v31 = vsub.f32 %v825_v22, %v2324_v35  ;;  %1522 = vlog2.f32 %v697_v59 }
 0x2bf   :  { %1131 = vst.msk [vmem:[%s2537_s4 + $0x30] sm:$0xff] %vm1124_vm0, %v1098_v54  ;;  %v826_v23 = vadd.f32 %v785_v15, %v2196_v10  ;;  %v2551_v54 = vld [vmem:[#allocation6_spill] sm:$0xff] }
 0x2c0   :  { %v1517_v32 = vpop.eup %1516  ;;  %1146 = vst.msk [vmem:[%s2537_s4 + $0xa8] sm:$0xff] %vm1124_vm0, %v1113_v31  ;;  %v2552_v31 = vld [vmem:[#allocation9_spill] sm:$0xff] }
 0x2c1   :  { %v1519_v63 = vpop.eup %1518  ;;  %v1114_v21 = vsub.f32 %v826_v23, %v2346_v55  ;;  %v757_v13 = vmul.f32 0.6931472, %v1517_v32  ;;  %v729_v20 = vpop.xlane.xlu1 %728 }
 0x2c2   :  { %v695_v35 = vpop.xlane.xlu0 %694  ;;  %v755_v24 = vmul.f32 0.6931472, %v1519_v63  ;;  %v2553_v63 = vld [vmem:[#allocation10_spill] sm:$0xff] }
 0x2c3   :  { %1147 = vst.msk [vmem:[%s2537_s4 + $0xb0] sm:$0xff] %vm1124_vm0, %v1114_v21  ;;  %v812_v10 = vadd.f32 %v757_v13, %v2212_v16  ;;  %1524 = vlog2.f32 %v695_v35 }
 0x2c4   :  { %v811_v40 = vadd.f32 %v755_v24, %v2222_v46  ;;  %1526 = vlog2.f32 %v725_v53  ;;  %v2554_v24 = vld [vmem:[#allocation8_spill] sm:$0xff] }
 0x2c5   :  { %v1521_v5 = vpop.eup %1520  ;;  %v1100_v28 = vsub.f32 %v812_v10, %v2226_v38 }
 0x2c6   :  { %v1099_v55 = vsub.f32 %v811_v40, %v2236_v39  ;;  %v787_v50 = vmul.f32 0.6931472, %v1521_v5  ;;  %v701_v34 = vpop.xlane.xlu1 %700  ;;  %v727_v38 = vpop.xlane.xlu0 %726 }
 0x2c7   :  { %1133 = vst.msk [vmem:[%s2537_s4 + $0x40] sm:$0xff] %vm1124_vm0, %v1100_v28  ;;  %1528 = vlog2.f32 %v701_v34 }
 0x2c8   :  { %v1523_v11 = vpop.eup %1522  ;;  %1132 = vst.msk [vmem:[%s2537_s4 + $0x38] sm:$0xff] %vm1124_vm0, %v1099_v55  ;;  %v827_v16 = vadd.f32 %v787_v50, %v2228_v29  ;;  %1530 = vlog2.f32 %v729_v20 }
 0x2c9   :  { %v761_v46 = vmul.f32 0.6931472, %v1523_v11 }
 0x2ca   :  { %v1115_v39 = vsub.f32 %v827_v16, %v2340_v25  ;;  %v733_v7 = vpop.xlane.xlu1 %732 }
 0x2cb   :  { %v814_v14 = vadd.f32 %v761_v46, %v2232_v19  ;;  %1532 = vlog2.f32 %v733_v7 }
 0x2cc   :  { %1148 = vst.msk [vmem:[%s2537_s4 + $0xb8] sm:$0xff] %vm1124_vm0, %v1115_v39 }
 0x2cd   :  { %v1525_v4 = vpop.eup %1524  ;;  %v1102_v18 = vsub.f32 %v814_v14, %v2246_v9  ;;  %v699_v6 = vpop.xlane.xlu0 %698 }
 0x2ce   :  { %v1527_v56 = vpop.eup %1526  ;;  %v759_v29 = vmul.f32 0.6931472, %v1525_v4  ;;  %1534 = vlog2.f32 %v699_v6  ;;  %v705_v8 = vpop.xlane.xlu1 %704  ;;  %v2555_v4 = vld [vmem:[#allocation7_spill] sm:$0xff] }
 0x2cf   :  { %1135 = vst.msk [vmem:[%s2537_s4 + $0x50] sm:$0xff] %vm1124_vm0, %v1102_v18  ;;  %1536 = vlog2.f32 %v705_v8  ;;  %v789_v48 = vmul.f32 0.6931472, %v1527_v56 }
 0x2d0   :  { %v813_v19 = vadd.f32 %v759_v29, %v2242_v61 }
 0x2d1   :  { %v1529_v25 = vpop.eup %1528  ;;  %v731_v41 = vpop.xlane.xlu0 %730  ;;  %v828_v53 = vadd.f32 %v789_v48, %v2550_v62 }
 0x2d2   :  { %v1531_v1 = vpop.eup %1530  ;;  %v1101_v45 = vsub.f32 %v813_v19, %v2256_v12  ;;  %v765_v30 = vmul.f32 0.6931472, %v1529_v25  ;;  %v737_v9 = vpop.xlane.xlu1 %736 }
 0x2d3   :  { %1538 = vlog2.f32 %v737_v9  ;;  %v793_v37 = vmul.f32 0.6931472, %v1531_v1 }
 0x2d4   :  { %1134 = vst.msk [vmem:[%s2537_s4 + $0x48] sm:$0xff] %vm1124_vm0, %v1101_v45  ;;  %v816_v36 = vadd.f32 %v765_v30, %v2252_v27  ;;  %1540 = vlog2.f32 %v727_v38 }
 0x2d5   :  { %v1533_v61 = vpop.eup %1532 }
 0x2d6   :  { %v1104_v0 = vsub.f32 %v816_v36, %v2318_v58  ;;  %v1077_v33 = vpop.xlane.xlu1 %1076  ;;  %v797_v43 = vmul.f32 0.6931472, %v1533_v61  ;;  %v830_v58 = vadd.f32 %v793_v37, %v2551_v54 }
 0x2d7   :  { %v1116_v12 = vsub.f32 %v828_v53, %v1077_v33 }
 0x2d8   :  { %v1535_v26 = vpop.eup %1534  ;;  %1137 = vst.msk [vmem:[%s2537_s4 + $0x60] sm:$0xff] %vm1124_vm0, %v1104_v0  ;;  %v832_v10 = vadd.f32 %v797_v43, %v2554_v24 }
 0x2d9   :  { %v1537_v47 = vpop.eup %1536  ;;  %v763_v22 = vmul.f32 0.6931472, %v1535_v26  ;;  %1149 = vst.msk [vmem:[%s2537_s4 + $0xc0] sm:$0xff] %vm1124_vm0, %v1116_v12  ;;  %v703_v27 = vpop.xlane.xlu0 %702 }
 0x2da   :  { %v769_v15 = vmul.f32 0.6931472, %v1537_v47  ;;  %1542 = vlog2.f32 %v703_v27  ;;  %v1081_v59 = vpop.xlane.xlu1 %1080 }
 0x2db   :  { %v815_v23 = vadd.f32 %v763_v22, %v2552_v31  ;;  %1544 = vlog2.f32 %v731_v41  ;;  %v1118_v32 = vsub.f32 %v830_v58, %v1081_v59 }
 0x2dc   :  { %v818_v21 = vadd.f32 %v769_v15, %v2553_v63 }
 0x2dd   :  { %v1539_v13 = vpop.eup %1538  ;;  %v1103_v20 = vsub.f32 %v815_v23, %v2278_v52  ;;  %1151 = vst.msk [vmem:[%s2537_s4 + $0xd0] sm:$0xff] %vm1124_vm0, %v1118_v32  ;;  %v735_v35 = vpop.xlane.xlu0 %734 }
 0x2de   :  { %v1106_v40 = vsub.f32 %v818_v21, %v2348_v49  ;;  %v801_v5 = vmul.f32 0.6931472, %v1539_v13  ;;  %v1085_v28 = vpop.xlane.xlu1 %1084  ;;  %1546 = vlog2.f32 %v735_v35  ;;  %v1541_v50 = vpop.eup %1540 }
 0x2df   :  { %1136 = vst.msk [vmem:[%s2537_s4 + $0x58] sm:$0xff] %vm1124_vm0, %v1103_v20  ;;  %v1120_v55 = vsub.f32 %v832_v10, %v1085_v28  ;;  %v791_v46 = vmul.f32 0.6931472, %v1541_v50 }
 0x2e0   :  { %1139 = vst.msk [vmem:[%s2537_s4 + $0x70] sm:$0xff] %vm1124_vm0, %v1106_v40  ;;  %v834_v52 = vadd.f32 %v801_v5, %v2274_v2 }
 0x2e1   :  { %1153 = vst.msk [vmem:[%s2537_s4 + $0xe0] sm:$0xff] %vm1124_vm0, %v1120_v55  ;;  %v707_v49 = vpop.xlane.xlu0 %706  ;;  %v829_v18 = vadd.f32 %v791_v46, %v2555_v4 }
 0x2e2   :  { %1548 = vlog2.f32 %v707_v49  ;;  %v1089_v34 = vpop.xlane.xlu1 %1088 }
 0x2e3   :  { %v1122_v11 = vsub.f32 %v834_v52, %v1089_v34 }
 0x2e4   :  { %v1543_v16 = vpop.eup %1542 }
 0x2e5   :  { %v1545_v38 = vpop.eup %1544  ;;  %v767_v39 = vmul.f32 0.6931472, %v1543_v16  ;;  %1155 = vst.msk [vmem:[%s2537_s4 + $0xf0] sm:$0xff] %vm1124_vm0, %v1122_v11  ;;  %v739_v2 = vpop.xlane.xlu0 %738 }
 0x2e6   :  { %1550 = vlog2.f32 %v739_v2  ;;  %v795_v14 = vmul.f32 0.6931472, %v1545_v38 }
 0x2e7   :  { %v817_v7 = vadd.f32 %v767_v39, %v2280_v3 }
 0x2e8   :  { %v1547_v6 = vpop.eup %1546  ;;  %v831_v3 = vadd.f32 %v795_v14, %v2270_v44 }
 0x2e9   :  { %v1105_v56 = vsub.f32 %v817_v7, %v2312_v51  ;;  %v1079_v29 = vpop.xlane.xlu0 %1078  ;;  %v799_v25 = vmul.f32 0.6931472, %v1547_v6 }
 0x2ea   :  { %v1117_v8 = vsub.f32 %v829_v18, %v1079_v29 }
 0x2eb   :  { %1138 = vst.msk [vmem:[%s2537_s4 + $0x68] sm:$0xff] %vm1124_vm0, %v1105_v56  ;;  %v833_v9 = vadd.f32 %v799_v25, %v2284_v17 }
 0x2ec   :  { %v1549_v19 = vpop.eup %1548  ;;  %1150 = vst.msk [vmem:[%s2537_s4 + $0xc8] sm:$0xff] %vm1124_vm0, %v1117_v8 }
 0x2ed   :  { %v771_v48 = vmul.f32 0.6931472, %v1549_v19  ;;  %v1083_v1 = vpop.xlane.xlu0 %1082 }
 0x2ee   :  { %v1119_v45 = vsub.f32 %v831_v3, %v1083_v1 }
 0x2ef   :  { %v819_v51 = vadd.f32 %v771_v48, %v2288_v60 }
 0x2f0   :  { %v1551_v30 = vpop.eup %1550  ;;  %1152 = vst.msk [vmem:[%s2537_s4 + $0xd8] sm:$0xff] %vm1124_vm0, %v1119_v45 }
 0x2f1   :  { %v1107_v36 = vsub.f32 %v819_v51, %v2344_v57  ;;  %v803_v37 = vmul.f32 0.6931472, %v1551_v30  ;;  %v1087_v41 = vpop.xlane.xlu0 %1086 }
 0x2f2   :  { %v1121_v62 = vsub.f32 %v833_v9, %v1087_v41 }
 0x2f3   :  { %1140 = vst.msk [vmem:[%s2537_s4 + $0x78] sm:$0xff] %vm1124_vm0, %v1107_v36  ;;  %v835_v44 = vadd.f32 %v803_v37, %v2294_v42 }
 0x2f4   :  { %1154 = vst.msk [vmem:[%s2537_s4 + $0xe8] sm:$0xff] %vm1124_vm0, %v1121_v62 }
 0x2f5   :  { %v1091_v60 = vpop.xlane.xlu0 %1090 }
 0x2f6   :  { %v1123_v53 = vsub.f32 %v835_v44, %v1091_v60 }
 0x2f8   :  { %1156 = vst.msk [vmem:[%s2537_s4 + $0xf8] sm:$0xff] %vm1124_vm0, %v1123_v53 }
 0x2f9   :  { %1574 = dma.done.wait [#allocation3], 4096  }
 0x2fa   :  { %1575 = vsyncadd [#allocation3], 4294963200 }
 0x2fb   :  { %1176 = vsyncpa [#allocation3], 1 }

</bundles_post_ra>
